<compile_context>
chip_gen: v7x
topology: tpu7x:2x2x1
jax: 0.10.0
libtpu: 0.0.40
codegen_flags: <defaults>
</compile_context>

<pallas_src>
import functools

import jax
import jax.numpy as jnp
from jax.experimental import pallas as pl
from jax.experimental.pallas import tpu as pltpu


# ----------------------------- in-kernel helpers -----------------------------

def _layernorm(x, gamma, beta, eps=1e-5):
    # x: (M, D) f32; gamma/beta: (1, D).  PyTorch LayerNorm uses biased variance.
    mean = jnp.mean(x, axis=-1, keepdims=True)
    var = jnp.mean((x - mean) ** 2, axis=-1, keepdims=True)
    return (x - mean) * jax.lax.rsqrt(var + eps) * gamma + beta


# ----------------------------- fused BERT kernel ------------------------------

def fused_bert_kernel(mask_ref, x_hbm_ref,
                      wqkv_ref, bqkv_ref, wo_ref, bo_ref,
                      g1_ref, be1_ref, w1_ref, b1_ref, w2_ref, b2_ref,
                      g2_ref, be2_ref,
                      cls_ref,
                      x_sc, dma_sem,
                      *, num_heads, batch_tile, head_chunk):
    b = pl.program_id(0)
    layer = pl.program_id(1)
    num_layers = pl.num_programs(1)

    M, D = x_sc.shape                       # M = batch_tile * S
    S = M // batch_tile
    H = num_heads
    hd = D // H
    Hc = head_chunk
    scale = 1.0 / float(hd) ** 0.5

    # Load this batch tile's embeddings from HBM exactly once (layer 0).  The
    # activation then lives in the VMEM scratch for the whole layer loop — no
    # HBM round-trips and no (S, D) input block held resident for all layers.
    @pl.when(layer == 0)
    def _():
        start = pl.multiple_of(b * M, M)
        cp = pltpu.make_async_copy(x_hbm_ref.at[pl.ds(start, M), :], x_sc, dma_sem)
        cp.start()
        cp.wait()

    x = x_sc[...]                            # (M, D) f32 residual stream
    x_bf = x.astype(jnp.bfloat16)

    # ---- fused QKV projection (pre-transposed bf16 weights, f32 accumulate) --
    qkv = jnp.dot(x_bf, wqkv_ref[0],
                  preferred_element_type=jnp.float32) + bqkv_ref[0]     # (M, 3D)

    # Key-padding mask, broadcast once (hoisted out of the head-chunk loop).
    key_valid = mask_ref[...] > 0.0                                      # (Bt, 1, S)
    key_valid = jnp.broadcast_to(key_valid[:, None, :, :],
                                 (batch_tile, Hc, 1, S))
    key_valid = key_valid.reshape(batch_tile * Hc, 1, S)

    def split_heads(block):                  # (M, Hc*hd) -> (Bt*Hc, S, hd)
        t = block.reshape(batch_tile, S, Hc, hd)
        return t.transpose(0, 2, 1, 3).reshape(batch_tile * Hc, S, hd)

    # ---- attention, head-chunked so live (scores, probs) stay bounded -------
    ctx_parts = []
    for c in range(H // Hc):
        lo = c * Hc * hd
        hi = lo + Hc * hd
        qc = split_heads(qkv[:, 0 * D + lo:0 * D + hi] * scale).astype(jnp.bfloat16)
        kc = split_heads(qkv[:, 1 * D + lo:1 * D + hi]).astype(jnp.bfloat16)
        vc = split_heads(qkv[:, 2 * D + lo:2 * D + hi]).astype(jnp.bfloat16)

        s = jnp.einsum('nqd,nkd->nqk', qc, kc,
                       preferred_element_type=jnp.float32)               # (Bt*Hc, S, S)
        s = jnp.where(key_valid, s, jnp.float32(-1e30))
        m = jnp.max(s, axis=-1, keepdims=True)
        p = jnp.exp(s - m)
        p = p * pl.reciprocal(jnp.sum(p, axis=-1, keepdims=True), approx=True)
        cc = jnp.einsum('nqk,nkd->nqd', p.astype(jnp.bfloat16), vc,
                        preferred_element_type=jnp.float32)              # (Bt*Hc, S, hd)
        cc = cc.reshape(batch_tile, Hc, S, hd).transpose(0, 2, 1, 3)
        ctx_parts.append(cc.reshape(M, Hc * hd))
    # TODO(synk): for hd < 128 a further win is packing 2+ heads per MXU matmul.
    ctx = ctx_parts[0] if len(ctx_parts) == 1 else jnp.concatenate(ctx_parts, -1)

    attn = jnp.dot(ctx.astype(jnp.bfloat16), wo_ref[0],
                   preferred_element_type=jnp.float32) + bo_ref[0]

    # ---- residual + LayerNorm 1 (post-norm) ----------------------------------
    x1 = _layernorm(x + attn, g1_ref[0], be1_ref[0])

    # ---- feed-forward (relu) --------------------------------------------------
    h1 = jnp.maximum(jnp.dot(x1.astype(jnp.bfloat16), w1_ref[0],
                             preferred_element_type=jnp.float32) + b1_ref[0], 0.0)
    ff = jnp.dot(h1.astype(jnp.bfloat16), w2_ref[0],
                 preferred_element_type=jnp.float32) + b2_ref[0]

    # ---- residual + LayerNorm 2 -----------------------------------------------
    x2 = _layernorm(x1 + ff, g2_ref[0], be2_ref[0])
    x_sc[...] = x2

    # ---- emit CLS rows after the last layer (classifier head runs in XLA) ----
    @pl.when(layer == num_layers - 1)
    def _():
        cls_ref[...] = x2.reshape(batch_tile, S, D)[:, 0:1, :]


# ----------------------------- tiling / budgeting helpers ---------------------

def _pick_batch_tile(B, requested=None):
    if requested is not None:
        assert B % requested == 0
        return requested
    # Largest tile that still leaves >= 2 batch grid steps (megacore on v7x).
    for bt in range(max(B // 2, 1), 0, -1):
        if B % bt == 0:
            return bt
    return 1


def _pick_head_chunk(H, requested=None):
    if requested is not None:
        assert H % requested == 0
        return requested
    for hc in (4, 3, 2, 1):
        if hc <= H and H % hc == 0:
            return hc
    return 1


def _vmem_limit_bytes(Bt, S, D, F, Hc):
    M = Bt * S
    w_bf16 = 2 * (D * 3 * D + D * D + D * F + F * D)      # per-layer matmul weights
    small = 4 * (3 * D + 7 * D + F)                        # biases + LN params (f32)
    layer_stream = 2 * (w_bf16 + small)                    # double-buffered pipeline
    x_scratch = 4 * M * D
    acts = 4 * M * (3 * D + 2 * D + F) + 2 * M * (3 * D + F)
    attn = 2 * 4 * Bt * Hc * S * S + 4 * M * D
    io = 4 * (2 * Bt * S + 2 * Bt * D)
    est = int((layer_stream + x_scratch + acts + attn + io) * 1.5) + (8 << 20)
    try:
        cap = int(pltpu.get_tpu_info().vmem_capacity_bytes * 0.9)
    except Exception:  # pragma: no cover - conservative fallback
        cap = 100 << 20
    return max(min(est, cap), 32 << 20)


# ----------------------------- parameter preparation --------------------------

def prepare_params(params):
    """Hoisted out of the forward path: stack per-layer weights, pre-transpose
    matmul weights to (in, out) and cast them to bf16 exactly once."""
    def stk(name):
        return jnp.stack([lyr[name] for lyr in params['layers']])

    def stk_t_bf16(name):
        return jnp.stack([lyr[name].T for lyr in params['layers']]).astype(jnp.bfloat16)

    return {
        'token_emb': params['token_emb'],
        'pos_emb': params['pos_emb'],
        'wqkv_t': stk_t_bf16('wqkv'),   # (L, D, 3D)
        'bqkv': stk('bqkv'),            # (L, 1, 3D)
        'wo_t': stk_t_bf16('wo'),       # (L, D, D)
        'bo': stk('bo'),
        'g1': stk('g1'), 'be1': stk('be1'),
        'w1_t': stk_t_bf16('w1'),       # (L, D, F)
        'b1': stk('b1'),
        'w2_t': stk_t_bf16('w2'),       # (L, F, D)
        'b2': stk('b2'),
        'g2': stk('g2'), 'be2': stk('be2'),
        # Classifier head stays in plain JAX (tiny (B,D)@(D,F) matmuls).
        'wc1_t': params['wc1'].T, 'bc1': params['bc1'],
        'wc2_t': params['wc2'].T, 'bc2': params['bc2'],
    }


# ----------------------------- forward pass -----------------------------------

def bert_classifier_forward(input_ids, attention_mask, p, *,
                            num_heads, batch_tile=None, head_chunk=None):
    B, S = input_ids.shape
    D = p['token_emb'].shape[1]
    F = p['w1_t'].shape[2]
    L = p['wqkv_t'].shape[0]
    H = num_heads
    assert D % H == 0

    Bt = _pick_batch_tile(B, batch_tile)
    Hc = _pick_head_chunk(H, head_chunk)

    # Embedding gather stays in plain JAX (data-dependent gather).
    tok = jnp.take(p['token_emb'], input_ids, axis=0)                    # (B, S, D)
    pos = p['pos_emb'][:S][None, :, :]
    x = (tok + pos).astype(jnp.float32)
    mask_f = attention_mask.astype(jnp.float32)                          # 1=keep, 0=pad

    # Pad S to a multiple of 8 (padded keys are masked out; padded query rows
    # are computed but discarded). D / F should be multiples of 128 for perf.
    S_pad = ((S + 7) // 8) * 8
    if S_pad != S:
        x = jnp.pad(x, ((0, 0), (0, S_pad - S), (0, 0)))
        mask_f = jnp.pad(mask_f, ((0, 0), (0, S_pad - S)))
    x_flat = x.reshape(B * S_pad, D)
    mask_f = mask_f.reshape(B, 1, S_pad)

    def layer_spec(shape):                   # indexed by the layer grid axis
        nd = len(shape)
        return pl.BlockSpec((1,) + tuple(shape[1:]),
                            lambda b, l, _nd=nd: (l,) + (0,) * (_nd - 1))

    in_specs = [
        pl.BlockSpec((Bt, 1, S_pad), lambda b, l: (b, 0, 0)),            # mask
        pl.BlockSpec(memory_space=pl.ANY),                               # x (HBM)
        layer_spec(p['wqkv_t'].shape), layer_spec(p['bqkv'].shape),
        layer_spec(p['wo_t'].shape), layer_spec(p['bo'].shape),
        layer_spec(p['g1'].shape), layer_spec(p['be1'].shape),
        layer_spec(p['w1_t'].shape), layer_spec(p['b1'].shape),
        layer_spec(p['w2_t'].shape), layer_spec(p['b2'].shape),
        layer_spec(p['g2'].shape), layer_spec(p['be2'].shape),
    ]
    out_specs = pl.BlockSpec((Bt, 1, D), lambda b, l: (b, 0, 0))

    cls = pl.pallas_call(
        functools.partial(fused_bert_kernel, num_heads=H,
                          batch_tile=Bt, head_chunk=Hc),
        out_shape=jax.ShapeDtypeStruct((B, 1, D), jnp.float32),
        grid_spec=pltpu.PrefetchScalarGridSpec(
            num_scalar_prefetch=0,
            grid=(B // Bt, L),                   # layer axis innermost (sequential)
            in_specs=in_specs,
            out_specs=out_specs,
            scratch_shapes=[pltpu.VMEM((Bt * S_pad, D), jnp.float32),
                            pltpu.SemaphoreType.DMA(())]),
        compiler_params=pltpu.CompilerParams(
            dimension_semantics=("parallel", "arbitrary"),
            vmem_limit_bytes=_vmem_limit_bytes(Bt, S_pad, D, F, Hc)),
    )(mask_f, x_flat,
      p['wqkv_t'], p['bqkv'], p['wo_t'], p['bo'], p['g1'], p['be1'],
      p['w1_t'], p['b1'], p['w2_t'], p['b2'], p['g2'], p['be2'])

    # Classifier head on the CLS token in plain JAX (XLA does this for free).
    cls = cls[:, 0, :]                                                   # (B, D)
    h = jnp.maximum(cls @ p['wc1_t'] + p['bc1'], 0.0)
    # TODO(synk): classifier Dropout(0.1) is identity at inference.
    logits = h @ p['wc2_t'] + p['bc2']
    return logits                                                        # (B, C)


# ----------------------------- parameter construction ------------------------

def init_params(key, vocab_size, embed_dim, hidden_dim, num_layers,
                num_classes, max_len):
    def nrm(k, shape, scale=0.02):
        return (scale * jax.random.normal(k, shape)).astype(jnp.float32)

    keys = jax.random.split(key, 4 + num_layers)
    params = {
        'token_emb': nrm(keys[0], (vocab_size, embed_dim)),
        'pos_emb': nrm(keys[1], (max_len, embed_dim)),
        'wc1': nrm(keys[2], (hidden_dim, embed_dim)),
        'bc1': jnp.zeros((1, hidden_dim), jnp.float32),
        'wc2': nrm(keys[3], (num_classes, hidden_dim)),
        'bc2': jnp.zeros((1, num_classes), jnp.float32),
        'layers': [],
    }
    for l in range(num_layers):
        lk = jax.random.split(keys[4 + l], 4)
        params['layers'].append({
            'wqkv': nrm(lk[0], (3 * embed_dim, embed_dim)),
            'bqkv': jnp.zeros((1, 3 * embed_dim), jnp.float32),
            'wo': nrm(lk[1], (embed_dim, embed_dim)),
            'bo': jnp.zeros((1, embed_dim), jnp.float32),
            'g1': jnp.ones((1, embed_dim), jnp.float32),
            'be1': jnp.zeros((1, embed_dim), jnp.float32),
            'w1': nrm(lk[2], (hidden_dim, embed_dim)),
            'b1': jnp.zeros((1, hidden_dim), jnp.float32),
            'w2': nrm(lk[3], (embed_dim, hidden_dim)),
            'b2': jnp.zeros((1, embed_dim), jnp.float32),
            'g2': jnp.ones((1, embed_dim), jnp.float32),
            'be2': jnp.zeros((1, embed_dim), jnp.float32),
        })
    return params


# ----------------------------- main --------------------------------------------

if __name__ == "__main__":
    # Module defaults for the width dims (lane-aligned: D=128, F=256), small
    # batch / sequence for a fast smoke test.
    vocab_size, embed_dim, hidden_dim = 100, 128, 256
    num_heads, num_layers, num_classes, max_len = 4, 2, 5, 64
    B, S = 2, 16

    key = jax.random.PRNGKey(0)
    k_param, k_ids = jax.random.split(key)

    params = init_params(k_param, vocab_size, embed_dim, hidden_dim,
                         num_layers, num_classes, max_len)
    prepped = prepare_params(params)      # hoisted out of the forward path

    input_ids = jax.random.randint(k_ids, (B, S), 0, vocab_size, dtype=jnp.int32)
    attention_mask = jnp.ones((B, S), dtype=jnp.int32).at[1, 12:].set(0)

    fwd = jax.jit(functools.partial(bert_classifier_forward, num_heads=num_heads))
    logits = jax.block_until_ready(fwd(input_ids, attention_mask, prepped))

    assert logits.shape == (B, num_classes)
    assert bool(jnp.all(jnp.isfinite(logits)))
    print("KERNEL_OK")
</pallas_src>

<mosaic_0001>
module attributes {stable_mosaic.version = 11 : i64} {
  func.func @fused_bert_kernel(%arg0: i32, %arg1: i32, %arg2: memref<1x1x16xf32, #tpu.memory_space<vmem>>, %arg3: memref<32x128xf32, #tpu.memory_space<any>>, %arg4: memref<1x128x384xbf16, #tpu.memory_space<vmem>>, %arg5: memref<1x1x384xf32, #tpu.memory_space<vmem>>, %arg6: memref<1x128x128xbf16, #tpu.memory_space<vmem>>, %arg7: memref<1x1x128xf32, #tpu.memory_space<vmem>>, %arg8: memref<1x1x128xf32, #tpu.memory_space<vmem>>, %arg9: memref<1x1x128xf32, #tpu.memory_space<vmem>>, %arg10: memref<1x128x256xbf16, #tpu.memory_space<vmem>>, %arg11: memref<1x1x256xf32, #tpu.memory_space<vmem>>, %arg12: memref<1x256x128xbf16, #tpu.memory_space<vmem>>, %arg13: memref<1x1x128xf32, #tpu.memory_space<vmem>>, %arg14: memref<1x1x128xf32, #tpu.memory_space<vmem>>, %arg15: memref<1x1x128xf32, #tpu.memory_space<vmem>>, %arg16: memref<1x1x128xf32, #tpu.memory_space<vmem>>, %arg17: memref<16x128xf32, #tpu.memory_space<vmem>>, %arg18: memref<!tpu.dma_semaphore, #tpu.memory_space<semaphore_mem>>) attributes {dimension_semantics = [#tpu.dimension_semantics<parallel>, #tpu.dimension_semantics<arbitrary>], iteration_bounds = array<i64: 2, 2>, scalar_prefetch = 0 : i64, scratch_operands = 2 : i64, tpu.core_type = #tpu.core_type<tc>, window_params = [{transform_indices = @transform_0, window_bounds = array<i64: 1, 1, 16>}, {}, {transform_indices = @transform_2, window_bounds = array<i64: 1, 128, 384>}, {transform_indices = @transform_3, window_bounds = array<i64: 1, 1, 384>}, {transform_indices = @transform_4, window_bounds = array<i64: 1, 128, 128>}, {transform_indices = @transform_5, window_bounds = array<i64: 1, 1, 128>}, {transform_indices = @transform_6, window_bounds = array<i64: 1, 1, 128>}, {transform_indices = @transform_7, window_bounds = array<i64: 1, 1, 128>}, {transform_indices = @transform_8, window_bounds = array<i64: 1, 128, 256>}, {transform_indices = @transform_9, window_bounds = array<i64: 1, 1, 256>}, {transform_indices = @transform_10, window_bounds = array<i64: 1, 256, 128>}, {transform_indices = @transform_11, window_bounds = array<i64: 1, 1, 128>}, {transform_indices = @transform_12, window_bounds = array<i64: 1, 1, 128>}, {transform_indices = @transform_13, window_bounds = array<i64: 1, 1, 128>}, {transform_indices = @transform_14, window_bounds = array<i64: 1, 1, 128>}]} {
    %c0_i32 = arith.constant 0 : i32
    %0 = arith.cmpi eq, %arg1, %c0_i32 : i32
    %1 = arith.extui %0 : i1 to i32
    %c0_i32_0 = arith.constant 0 : i32
    %2 = arith.cmpi ne, %1, %c0_i32_0 : i32
    scf.if %2 {
      %c16_i32 = arith.constant 16 : i32
      %140 = arith.muli %arg0, %c16_i32 : i32
      %141 = tpu.assume_multiple %140, 16 : i32
      %c0_i32_65 = arith.constant 0 : i32
      %142 = tpu.memref_slice %arg3[%141, %c0_i32_65] : memref<32x128xf32, #tpu.memory_space<any>> -> memref<16x128xf32, #tpu.memory_space<any>>
      tpu.enqueue_dma source(%142 : memref<16x128xf32, #tpu.memory_space<any>>) target(%arg17 : memref<16x128xf32, #tpu.memory_space<vmem>>) target_semaphore(%arg18 : memref<!tpu.dma_semaphore, #tpu.memory_space<semaphore_mem>>)
      %c0_i32_66 = arith.constant 0 : i32
      %143 = tpu.memref_slice %arg3[%141, %c0_i32_66] : memref<32x128xf32, #tpu.memory_space<any>> -> memref<16x128xf32, #tpu.memory_space<any>>
      tpu.wait_dma2 semaphore(%arg18 : memref<!tpu.dma_semaphore, #tpu.memory_space<semaphore_mem>>) src(%143 : memref<16x128xf32, #tpu.memory_space<any>>) dst(%arg17 : memref<16x128xf32, #tpu.memory_space<vmem>>)
    } else {
    }
    %c0 = arith.constant 0 : index
    %c0_1 = arith.constant 0 : index
    %3 = vector.load %arg17[%c0, %c0_1] : memref<16x128xf32, #tpu.memory_space<vmem>>, vector<16x128xf32>
    %4 = arith.truncf %3 : vector<16x128xf32> to vector<16x128xbf16>
    %c0_2 = arith.constant 0 : index
    %c0_3 = arith.constant 0 : index
    %c0_4 = arith.constant 0 : index
    %5 = vector.load %arg4[%c0_2, %c0_3, %c0_4] : memref<1x128x384xbf16, #tpu.memory_space<vmem>>, vector<1x128x384xbf16>
    %6 = vector.shape_cast %5 : vector<1x128x384xbf16> to vector<128x384xbf16>
    %cst = arith.constant dense<0.000000e+00> : vector<16x384xf32>
    %7 = tpu.matmul %4, %6, %cst {dimension_numbers = #tpu.dot_dimension_numbers<[1], [0], [0], [1], [0, 0, 1, 1], [], []>} : vector<16x128xbf16>, vector<128x384xbf16>, vector<16x384xf32> -> vector<16x384xf32>
    %c0_5 = arith.constant 0 : index
    %c0_6 = arith.constant 0 : index
    %c0_7 = arith.constant 0 : index
    %8 = vector.load %arg5[%c0_5, %c0_6, %c0_7] : memref<1x1x384xf32, #tpu.memory_space<vmem>>, vector<1x1x384xf32>
    %9 = vector.shape_cast %8 : vector<1x1x384xf32> to vector<1x384xf32>
    %10 = vector.broadcast %9 : vector<1x384xf32> to vector<16x384xf32>
    %11 = arith.addf %7, %10 : vector<16x384xf32>
    %c0_8 = arith.constant 0 : index
    %c0_9 = arith.constant 0 : index
    %c0_10 = arith.constant 0 : index
    %12 = vector.load %arg2[%c0_8, %c0_9, %c0_10] : memref<1x1x16xf32, #tpu.memory_space<vmem>>, vector<1x1x16xf32>
    %cst_11 = arith.constant 0.000000e+00 : f32
    %13 = vector.broadcast %cst_11 : f32 to vector<1x1x16xf32>
    %14 = arith.cmpf ogt, %12, %13 : vector<1x1x16xf32>
    %15 = vector.shape_cast %14 : vector<1x1x16xi1> to vector<1x1x1x16xi1>
    %16 = vector.shape_cast %15 : vector<1x1x1x16xi1> to vector<1x1x1x16xi1>
    %17 = vector.broadcast %16 : vector<1x1x1x16xi1> to vector<1x4x1x16xi1>
    %18 = vector.shape_cast %17 : vector<1x4x1x16xi1> to vector<4x1x16xi1>
    %19 = vector.extract_strided_slice %11 {offsets = [0, 0], sizes = [16, 128], strides = [1, 1]} : vector<16x384xf32> to vector<16x128xf32>
    %cst_12 = arith.constant 0.176776692 : f32
    %20 = vector.broadcast %cst_12 : f32 to vector<16x128xf32>
    %21 = arith.mulf %19, %20 : vector<16x128xf32>
    %22 = vector.shape_cast %21 : vector<16x128xf32> to vector<1x16x4x32xf32>
    %23 = tpu.transpose %22, [0, 2, 1, 3] : vector<1x16x4x32xf32> -> vector<1x4x16x32xf32>
    %24 = vector.shape_cast %23 : vector<1x4x16x32xf32> to vector<4x16x32xf32>
    %25 = arith.truncf %24 : vector<4x16x32xf32> to vector<4x16x32xbf16>
    %26 = vector.extract_strided_slice %11 {offsets = [0, 128], sizes = [16, 128], strides = [1, 1]} : vector<16x384xf32> to vector<16x128xf32>
    %27 = vector.shape_cast %26 : vector<16x128xf32> to vector<1x16x4x32xf32>
    %28 = tpu.transpose %27, [0, 2, 1, 3] : vector<1x16x4x32xf32> -> vector<1x4x16x32xf32>
    %29 = vector.shape_cast %28 : vector<1x4x16x32xf32> to vector<4x16x32xf32>
    %30 = arith.truncf %29 : vector<4x16x32xf32> to vector<4x16x32xbf16>
    %31 = vector.extract_strided_slice %11 {offsets = [0, 256], sizes = [16, 128], strides = [1, 1]} : vector<16x384xf32> to vector<16x128xf32>
    %32 = vector.shape_cast %31 : vector<16x128xf32> to vector<1x16x4x32xf32>
    %33 = tpu.transpose %32, [0, 2, 1, 3] : vector<1x16x4x32xf32> -> vector<1x4x16x32xf32>
    %34 = vector.shape_cast %33 : vector<1x4x16x32xf32> to vector<4x16x32xf32>
    %35 = arith.truncf %34 : vector<4x16x32xf32> to vector<4x16x32xbf16>
    "tpu.trace_start"() <{level = 10 : i32, message = "nqd,nkd->nqk"}> : () -> ()
    %cst_13 = arith.constant dense<0.000000e+00> : vector<4x16x16xf32>
    %36 = tpu.matmul %25, %30, %cst_13 {dimension_numbers = #tpu.dot_dimension_numbers<[2], [2], [1], [1], [0, 0, 0, 1, 1, 1], [0], [0]>} : vector<4x16x32xbf16>, vector<4x16x32xbf16>, vector<4x16x16xf32> -> vector<4x16x16xf32>
    %cst_14 = arith.constant -1.000000e+30 : f32
    "tpu.trace_stop"() : () -> ()
    %37 = vector.shape_cast %18 : vector<4x1x16xi1> to vector<4x1x16xi1>
    %38 = vector.broadcast %37 : vector<4x1x16xi1> to vector<4x16x16xi1>
    %39 = vector.broadcast %cst_14 : f32 to vector<4x16x16xf32>
    %40 = arith.select %38, %36, %39 : vector<4x16x16xi1>, vector<4x16x16xf32>
    %cst_15 = arith.constant dense<0xFF800000> : vector<4x16xf32>
    %41 = vector.multi_reduction <maximumf>, %40, %cst_15 [2] : vector<4x16x16xf32> to vector<4x16xf32>
    %42 = vector.shape_cast %41 : vector<4x16xf32> to vector<4x16x1xf32>
    %43 = vector.broadcast %42 : vector<4x16x1xf32> to vector<4x16x16xf32>
    %44 = arith.subf %40, %43 : vector<4x16x16xf32>
    %45 = math.exp %44 : vector<4x16x16xf32>
    %cst_16 = arith.constant dense<0.000000e+00> : vector<4x16xf32>
    %46 = vector.multi_reduction <add>, %45, %cst_16 [2] : vector<4x16x16xf32> to vector<4x16xf32>
    %47 = vector.shape_cast %46 : vector<4x16xf32> to vector<4x16x1xf32>
    %48 = tpu.reciprocal %47 {approx = true} : vector<4x16x1xf32> -> vector<4x16x1xf32>
    %49 = vector.broadcast %48 : vector<4x16x1xf32> to vector<4x16x16xf32>
    %50 = arith.mulf %45, %49 : vector<4x16x16xf32>
    %51 = arith.truncf %50 : vector<4x16x16xf32> to vector<4x16x16xbf16>
    "tpu.trace_start"() <{level = 10 : i32, message = "nqk,nkd->nqd"}> : () -> ()
    %cst_17 = arith.constant dense<0.000000e+00> : vector<4x16x32xf32>
    %52 = tpu.matmul %51, %35, %cst_17 {dimension_numbers = #tpu.dot_dimension_numbers<[2], [1], [1], [2], [0, 0, 0, 1, 1, 2], [0], [0]>} : vector<4x16x16xbf16>, vector<4x16x32xbf16>, vector<4x16x32xf32> -> vector<4x16x32xf32>
    "tpu.trace_stop"() : () -> ()
    %53 = vector.shape_cast %52 : vector<4x16x32xf32> to vector<1x4x16x32xf32>
    %54 = tpu.transpose %53, [0, 2, 1, 3] : vector<1x4x16x32xf32> -> vector<1x16x4x32xf32>
    %55 = vector.shape_cast %54 : vector<1x16x4x32xf32> to vector<16x128xf32>
    %56 = arith.truncf %55 : vector<16x128xf32> to vector<16x128xbf16>
    %c0_18 = arith.constant 0 : index
    %c0_19 = arith.constant 0 : index
    %c0_20 = arith.constant 0 : index
    %57 = vector.load %arg6[%c0_18, %c0_19, %c0_20] : memref<1x128x128xbf16, #tpu.memory_space<vmem>>, vector<1x128x128xbf16>
    %58 = vector.shape_cast %57 : vector<1x128x128xbf16> to vector<128x128xbf16>
    %cst_21 = arith.constant dense<0.000000e+00> : vector<16x128xf32>
    %59 = tpu.matmul %56, %58, %cst_21 {dimension_numbers = #tpu.dot_dimension_numbers<[1], [0], [0], [1], [0, 0, 1, 1], [], []>} : vector<16x128xbf16>, vector<128x128xbf16>, vector<16x128xf32> -> vector<16x128xf32>
    %c0_22 = arith.constant 0 : index
    %c0_23 = arith.constant 0 : index
    %c0_24 = arith.constant 0 : index
    %60 = vector.load %arg7[%c0_22, %c0_23, %c0_24] : memref<1x1x128xf32, #tpu.memory_space<vmem>>, vector<1x1x128xf32>
    %61 = vector.shape_cast %60 : vector<1x1x128xf32> to vector<1x128xf32>
    %62 = vector.broadcast %61 : vector<1x128xf32> to vector<16x128xf32>
    %63 = arith.addf %59, %62 : vector<16x128xf32>
    %64 = arith.addf %3, %63 : vector<16x128xf32>
    %c0_25 = arith.constant 0 : index
    %c0_26 = arith.constant 0 : index
    %c0_27 = arith.constant 0 : index
    %65 = vector.load %arg8[%c0_25, %c0_26, %c0_27] : memref<1x1x128xf32, #tpu.memory_space<vmem>>, vector<1x1x128xf32>
    %66 = vector.shape_cast %65 : vector<1x1x128xf32> to vector<1x128xf32>
    %c0_28 = arith.constant 0 : index
    %c0_29 = arith.constant 0 : index
    %c0_30 = arith.constant 0 : index
    %67 = vector.load %arg9[%c0_28, %c0_29, %c0_30] : memref<1x1x128xf32, #tpu.memory_space<vmem>>, vector<1x1x128xf32>
    %68 = vector.shape_cast %67 : vector<1x1x128xf32> to vector<1x128xf32>
    %cst_31 = arith.constant dense<0.000000e+00> : vector<16xf32>
    %69 = vector.multi_reduction <add>, %64, %cst_31 [1] : vector<16x128xf32> to vector<16xf32>
    %70 = vector.shape_cast %69 : vector<16xf32> to vector<16x1xf32>
    %cst_32 = arith.constant 1.280000e+02 : f32
    %71 = vector.broadcast %cst_32 : f32 to vector<16x1xf32>
    %72 = arith.divf %70, %71 : vector<16x1xf32>
    %73 = vector.broadcast %72 : vector<16x1xf32> to vector<16x128xf32>
    %74 = arith.subf %64, %73 : vector<16x128xf32>
    %75 = arith.mulf %74, %74 : vector<16x128xf32>
    %cst_33 = arith.constant dense<0.000000e+00> : vector<16xf32>
    %76 = vector.multi_reduction <add>, %75, %cst_33 [1] : vector<16x128xf32> to vector<16xf32>
    %77 = vector.shape_cast %76 : vector<16xf32> to vector<16x1xf32>
    %cst_34 = arith.constant 1.280000e+02 : f32
    %78 = vector.broadcast %cst_34 : f32 to vector<16x1xf32>
    %79 = arith.divf %77, %78 : vector<16x1xf32>
    %80 = vector.broadcast %72 : vector<16x1xf32> to vector<16x128xf32>
    %81 = arith.subf %64, %80 : vector<16x128xf32>
    %cst_35 = arith.constant 9.99999974E-6 : f32
    %82 = vector.broadcast %cst_35 : f32 to vector<16x1xf32>
    %83 = arith.addf %79, %82 : vector<16x1xf32>
    %84 = math.rsqrt %83 : vector<16x1xf32>
    %85 = vector.broadcast %84 : vector<16x1xf32> to vector<16x128xf32>
    %86 = arith.mulf %81, %85 : vector<16x128xf32>
    %87 = vector.broadcast %66 : vector<1x128xf32> to vector<16x128xf32>
    %88 = arith.mulf %86, %87 : vector<16x128xf32>
    %89 = vector.broadcast %68 : vector<1x128xf32> to vector<16x128xf32>
    %90 = arith.addf %88, %89 : vector<16x128xf32>
    %91 = arith.truncf %90 : vector<16x128xf32> to vector<16x128xbf16>
    %c0_36 = arith.constant 0 : index
    %c0_37 = arith.constant 0 : index
    %c0_38 = arith.constant 0 : index
    %92 = vector.load %arg10[%c0_36, %c0_37, %c0_38] : memref<1x128x256xbf16, #tpu.memory_space<vmem>>, vector<1x128x256xbf16>
    %93 = vector.shape_cast %92 : vector<1x128x256xbf16> to vector<128x256xbf16>
    %cst_39 = arith.constant dense<0.000000e+00> : vector<16x256xf32>
    %94 = tpu.matmul %91, %93, %cst_39 {dimension_numbers = #tpu.dot_dimension_numbers<[1], [0], [0], [1], [0, 0, 1, 1], [], []>} : vector<16x128xbf16>, vector<128x256xbf16>, vector<16x256xf32> -> vector<16x256xf32>
    %c0_40 = arith.constant 0 : index
    %c0_41 = arith.constant 0 : index
    %c0_42 = arith.constant 0 : index
    %95 = vector.load %arg11[%c0_40, %c0_41, %c0_42] : memref<1x1x256xf32, #tpu.memory_space<vmem>>, vector<1x1x256xf32>
    %96 = vector.shape_cast %95 : vector<1x1x256xf32> to vector<1x256xf32>
    %97 = vector.broadcast %96 : vector<1x256xf32> to vector<16x256xf32>
    %98 = arith.addf %94, %97 : vector<16x256xf32>
    %cst_43 = arith.constant 0.000000e+00 : f32
    %99 = vector.broadcast %cst_43 : f32 to vector<16x256xf32>
    %100 = arith.maximumf %98, %99 : vector<16x256xf32>
    %101 = arith.truncf %100 : vector<16x256xf32> to vector<16x256xbf16>
    %c0_44 = arith.constant 0 : index
    %c0_45 = arith.constant 0 : index
    %c0_46 = arith.constant 0 : index
    %102 = vector.load %arg12[%c0_44, %c0_45, %c0_46] : memref<1x256x128xbf16, #tpu.memory_space<vmem>>, vector<1x256x128xbf16>
    %103 = vector.shape_cast %102 : vector<1x256x128xbf16> to vector<256x128xbf16>
    %cst_47 = arith.constant dense<0.000000e+00> : vector<16x128xf32>
    %104 = tpu.matmul %101, %103, %cst_47 {dimension_numbers = #tpu.dot_dimension_numbers<[1], [0], [0], [1], [0, 0, 1, 1], [], []>} : vector<16x256xbf16>, vector<256x128xbf16>, vector<16x128xf32> -> vector<16x128xf32>
    %c0_48 = arith.constant 0 : index
    %c0_49 = arith.constant 0 : index
    %c0_50 = arith.constant 0 : index
    %105 = vector.load %arg13[%c0_48, %c0_49, %c0_50] : memref<1x1x128xf32, #tpu.memory_space<vmem>>, vector<1x1x128xf32>
    %106 = vector.shape_cast %105 : vector<1x1x128xf32> to vector<1x128xf32>
    %107 = vector.broadcast %106 : vector<1x128xf32> to vector<16x128xf32>
    %108 = arith.addf %104, %107 : vector<16x128xf32>
    %109 = arith.addf %90, %108 : vector<16x128xf32>
    %c0_51 = arith.constant 0 : index
    %c0_52 = arith.constant 0 : index
    %c0_53 = arith.constant 0 : index
    %110 = vector.load %arg14[%c0_51, %c0_52, %c0_53] : memref<1x1x128xf32, #tpu.memory_space<vmem>>, vector<1x1x128xf32>
    %111 = vector.shape_cast %110 : vector<1x1x128xf32> to vector<1x128xf32>
    %c0_54 = arith.constant 0 : index
    %c0_55 = arith.constant 0 : index
    %c0_56 = arith.constant 0 : index
    %112 = vector.load %arg15[%c0_54, %c0_55, %c0_56] : memref<1x1x128xf32, #tpu.memory_space<vmem>>, vector<1x1x128xf32>
    %113 = vector.shape_cast %112 : vector<1x1x128xf32> to vector<1x128xf32>
    %cst_57 = arith.constant dense<0.000000e+00> : vector<16xf32>
    %114 = vector.multi_reduction <add>, %109, %cst_57 [1] : vector<16x128xf32> to vector<16xf32>
    %115 = vector.shape_cast %114 : vector<16xf32> to vector<16x1xf32>
    %cst_58 = arith.constant 1.280000e+02 : f32
    %116 = vector.broadcast %cst_58 : f32 to vector<16x1xf32>
    %117 = arith.divf %115, %116 : vector<16x1xf32>
    %118 = vector.broadcast %117 : vector<16x1xf32> to vector<16x128xf32>
    %119 = arith.subf %109, %118 : vector<16x128xf32>
    %120 = arith.mulf %119, %119 : vector<16x128xf32>
    %cst_59 = arith.constant dense<0.000000e+00> : vector<16xf32>
    %121 = vector.multi_reduction <add>, %120, %cst_59 [1] : vector<16x128xf32> to vector<16xf32>
    %122 = vector.shape_cast %121 : vector<16xf32> to vector<16x1xf32>
    %cst_60 = arith.constant 1.280000e+02 : f32
    %123 = vector.broadcast %cst_60 : f32 to vector<16x1xf32>
    %124 = arith.divf %122, %123 : vector<16x1xf32>
    %125 = vector.broadcast %117 : vector<16x1xf32> to vector<16x128xf32>
    %126 = arith.subf %109, %125 : vector<16x128xf32>
    %cst_61 = arith.constant 9.99999974E-6 : f32
    %127 = vector.broadcast %cst_61 : f32 to vector<16x1xf32>
    %128 = arith.addf %124, %127 : vector<16x1xf32>
    %129 = math.rsqrt %128 : vector<16x1xf32>
    %130 = vector.broadcast %129 : vector<16x1xf32> to vector<16x128xf32>
    %131 = arith.mulf %126, %130 : vector<16x128xf32>
    %132 = vector.broadcast %111 : vector<1x128xf32> to vector<16x128xf32>
    %133 = arith.mulf %131, %132 : vector<16x128xf32>
    %134 = vector.broadcast %113 : vector<1x128xf32> to vector<16x128xf32>
    %135 = arith.addf %133, %134 : vector<16x128xf32>
    %c0_62 = arith.constant 0 : index
    %c0_63 = arith.constant 0 : index
    %136 = vector.load %arg17[%c0_62, %c0_63] : memref<16x128xf32, #tpu.memory_space<vmem>>, vector<16x128xf32>
    tpu.vector_store %arg17[%c0_62, %c0_63], %135 {strides = array<i32>} : memref<16x128xf32, #tpu.memory_space<vmem>>, vector<16x128xf32>,
    %c1_i32 = arith.constant 1 : i32
    %137 = arith.cmpi eq, %arg1, %c1_i32 : i32
    %138 = arith.extui %137 : i1 to i32
    %c0_i32_64 = arith.constant 0 : i32
    %139 = arith.cmpi ne, %138, %c0_i32_64 : i32
    scf.if %139 {
      %140 = vector.shape_cast %135 : vector<16x128xf32> to vector<1x16x128xf32>
      %141 = vector.extract_strided_slice %140 {offsets = [0, 0, 0], sizes = [1, 1, 128], strides = [1, 1, 1]} : vector<1x16x128xf32> to vector<1x1x128xf32>
      %c0_65 = arith.constant 0 : index
      %c0_66 = arith.constant 0 : index
      %c0_67 = arith.constant 0 : index
      %142 = vector.load %arg16[%c0_65, %c0_66, %c0_67] : memref<1x1x128xf32, #tpu.memory_space<vmem>>, vector<1x1x128xf32>
      tpu.vector_store %arg16[%c0_65, %c0_66, %c0_67], %141 {strides = array<i32>} : memref<1x1x128xf32, #tpu.memory_space<vmem>>, vector<1x1x128xf32>,
    } else {
    }
    return
  }
  func.func @transform_0(%arg0: i32, %arg1: i32) -> (i32, i32, i32) {
    %c0_i32 = arith.constant 0 : i32
    %c0_i32_0 = arith.constant 0 : i32
    %c0_i32_1 = arith.constant 0 : i32
    return %arg0, %c0_i32, %c0_i32_0 : i32, i32, i32
  }
  func.func @transform_2(%arg0: i32, %arg1: i32) -> (i32, i32, i32) {
    %c0_i32 = arith.constant 0 : i32
    %c0_i32_0 = arith.constant 0 : i32
    %c0_i32_1 = arith.constant 0 : i32
    return %arg1, %c0_i32, %c0_i32_0 : i32, i32, i32
  }
  func.func @transform_3(%arg0: i32, %arg1: i32) -> (i32, i32, i32) {
    %c0_i32 = arith.constant 0 : i32
    %c0_i32_0 = arith.constant 0 : i32
    %c0_i32_1 = arith.constant 0 : i32
    return %arg1, %c0_i32, %c0_i32_0 : i32, i32, i32
  }
  func.func @transform_4(%arg0: i32, %arg1: i32) -> (i32, i32, i32) {
    %c0_i32 = arith.constant 0 : i32
    %c0_i32_0 = arith.constant 0 : i32
    %c0_i32_1 = arith.constant 0 : i32
    return %arg1, %c0_i32, %c0_i32_0 : i32, i32, i32
  }
  func.func @transform_5(%arg0: i32, %arg1: i32) -> (i32, i32, i32) {
    %c0_i32 = arith.constant 0 : i32
    %c0_i32_0 = arith.constant 0 : i32
    %c0_i32_1 = arith.constant 0 : i32
    return %arg1, %c0_i32, %c0_i32_0 : i32, i32, i32
  }
  func.func @transform_6(%arg0: i32, %arg1: i32) -> (i32, i32, i32) {
    %c0_i32 = arith.constant 0 : i32
    %c0_i32_0 = arith.constant 0 : i32
    %c0_i32_1 = arith.constant 0 : i32
    return %arg1, %c0_i32, %c0_i32_0 : i32, i32, i32
  }
  func.func @transform_7(%arg0: i32, %arg1: i32) -> (i32, i32, i32) {
    %c0_i32 = arith.constant 0 : i32
    %c0_i32_0 = arith.constant 0 : i32
    %c0_i32_1 = arith.constant 0 : i32
    return %arg1, %c0_i32, %c0_i32_0 : i32, i32, i32
  }
  func.func @transform_8(%arg0: i32, %arg1: i32) -> (i32, i32, i32) {
    %c0_i32 = arith.constant 0 : i32
    %c0_i32_0 = arith.constant 0 : i32
    %c0_i32_1 = arith.constant 0 : i32
    return %arg1, %c0_i32, %c0_i32_0 : i32, i32, i32
  }
  func.func @transform_9(%arg0: i32, %arg1: i32) -> (i32, i32, i32) {
    %c0_i32 = arith.constant 0 : i32
    %c0_i32_0 = arith.constant 0 : i32
    %c0_i32_1 = arith.constant 0 : i32
    return %arg1, %c0_i32, %c0_i32_0 : i32, i32, i32
  }
  func.func @transform_10(%arg0: i32, %arg1: i32) -> (i32, i32, i32) {
    %c0_i32 = arith.constant 0 : i32
    %c0_i32_0 = arith.constant 0 : i32
    %c0_i32_1 = arith.constant 0 : i32
    return %arg1, %c0_i32, %c0_i32_0 : i32, i32, i32
  }
  func.func @transform_11(%arg0: i32, %arg1: i32) -> (i32, i32, i32) {
    %c0_i32 = arith.constant 0 : i32
    %c0_i32_0 = arith.constant 0 : i32
    %c0_i32_1 = arith.constant 0 : i32
    return %arg1, %c0_i32, %c0_i32_0 : i32, i32, i32
  }
  func.func @transform_12(%arg0: i32, %arg1: i32) -> (i32, i32, i32) {
    %c0_i32 = arith.constant 0 : i32
    %c0_i32_0 = arith.constant 0 : i32
    %c0_i32_1 = arith.constant 0 : i32
    return %arg1, %c0_i32, %c0_i32_0 : i32, i32, i32
  }
  func.func @transform_13(%arg0: i32, %arg1: i32) -> (i32, i32, i32) {
    %c0_i32 = arith.constant 0 : i32
    %c0_i32_0 = arith.constant 0 : i32
    %c0_i32_1 = arith.constant 0 : i32
    return %arg1, %c0_i32, %c0_i32_0 : i32, i32, i32
  }
  func.func @transform_14(%arg0: i32, %arg1: i32) -> (i32, i32, i32) {
    %c0_i32 = arith.constant 0 : i32
    %c0_i32_0 = arith.constant 0 : i32
    %c0_i32_1 = arith.constant 0 : i32
    return %arg0, %c0_i32, %c0_i32_0 : i32, i32, i32
  }
}

</mosaic_0001>

<bundles_post_ra>
// kernel: bert_classifier_forward.1
= control target key start
LH: loop header
LB: loop body
LE: loop exit
PB: predicated region body
PF: predicated region fallthrough
CT: control target
= control target key end

     0   :  { %s5001_s0 = inlined_call_operand.vmem [shape: f32[2,1,16], index: 0, kind: input, shape index: {}]   ;;  %s5002_s1 = inlined_call_operand.vmem [shape: f32[32,128], index: 1, kind: input, shape index: {}]   ;;  %s5003_s2 = inlined_call_operand.vmem [shape: bf16[2,128,384], index: 2, kind: input, shape index: {}]   ;;  %s5004_s3 = inlined_call_operand.vmem [shape: f32[2,1,384], index: 3, kind: input, shape index: {}]   ;;  %s5005_s4 = inlined_call_operand.hbm [shape: bf16[2,128,128], index: 4, kind: input, shape index: {}]   ;;  %s5006_s5 = inlined_call_operand.vmem [shape: f32[2,1,128], index: 5, kind: input, shape index: {}]   ;;  %s5007_s6 = inlined_call_operand.vmem [shape: f32[2,1,128], index: 6, kind: input, shape index: {}]   ;;  %s5008_s7 = inlined_call_operand.vmem [shape: f32[2,1,128], index: 7, kind: input, shape index: {}]   ;;  %s5009_s8 = inlined_call_operand.hbm [shape: bf16[2,128,256], index: 8, kind: input, shape index: {}]   ;;  %s5010_s9 = inlined_call_operand.vmem [shape: f32[2,1,256], index: 9, kind: input, shape index: {}]   ;;  %s5011_s10 = inlined_call_operand.hbm [shape: bf16[2,256,128], index: 10, kind: input, shape index: {}]   ;;  %s5012_s11 = inlined_call_operand.vmem [shape: f32[2,1,128], index: 11, kind: input, shape index: {}]   ;;  %s5013_s12 = inlined_call_operand.vmem [shape: f32[2,1,128], index: 12, kind: input, shape index: {}]   ;;  %s5014_s13 = inlined_call_operand.vmem [shape: f32[2,1,128], index: 13, kind: input, shape index: {}]   ;;  %s5015_s14 = inlined_call_operand.vmem [shape: f32[2,1,128], index: 14, kind: output, shape index: {}]  }
   0x1   :  { %5026 = sst [smem:[#allocation21_spill]] %s5002_s1 }
   0x2   :  { %5027 = sst [smem:[#allocation22_spill]] %s5003_s2 }
   0x3   :  { %5028 = sst [smem:[#allocation23_spill]] %s5004_s3 }
   0x4   :  { %5029 = sst [smem:[#allocation24_spill]] %s5005_s4 }
   0x5   :  { %5030 = sst [smem:[#allocation25_spill]] %s5007_s6 }
   0x6   :  { %5031 = sst [smem:[#allocation26_spill]] %s5008_s7 }
   0x7   :  { %5032 = sst [smem:[#allocation27_spill]] %s5009_s8 }
   0x8   :  { %5033 = sst [smem:[#allocation28_spill]] %s5010_s9 }
   0x9   :  { %5034 = sst [smem:[#allocation29_spill]] %s5011_s10 }
   0xa   :  { %5035 = sst [smem:[#allocation30_spill]] %s5012_s11 }
   0xb   :  { %5036 = sst [smem:[#allocation31_spill]] %s5013_s12 }
   0xc   :  { %5037 = sst [smem:[#allocation32_spill]] %s5014_s13 }
   0xd   :  { %5038 = sst [smem:[#allocation33_spill]] %s5015_s14 }
   0xe   :  { %19 = vsyncpa [#allocation5], 0 }
   0xf   :  { %21 = vsyncpa [#allocation5 + $0x1], 0 }
  0x10   :  { %22 = vsyncpa [#allocation7], 0 }
  0x11   :  { %24 = vsyncpa [#allocation7 + $0x1], 0  ;;  %s4204_s29 = smov 0   ;;  %s4206_s30 = smov 0  }
  0x12   :  { %s4208_s15 = smov 0   ;;  %s4210_s16 = smov 0  }
  0x13   :  { %s4212_s17 = smov 0   ;;  %s4214_s18 = smov 0  }
  0x14   :  { %s4216_s19 = smov 0   ;;  %s4218_s20 = smov 0  }
  0x15 LB: > { %5039 = sst [smem:[#allocation13_spill]] %s4088_s30  ;;  %s5017_s21 = sadd.s32 4294967295, %s4112_s20   ;;  %s4112_s20 = sphi %s4218_s20, %s30_s20   ;;  %s4108_s19 = sphi %s4216_s19, %s5089_s19   ;;  %s4104_s18 = sphi %s4214_s18, %s5088_s18   ;;  %s4100_s17 = sphi %s4212_s17, %s5087_s17   ;;  %s4096_s16 = sphi %s4210_s16, %s5086_s16   ;;  %s4092_s15 = sphi %s4208_s15, %s5085_s15   ;;  %s4088_s30 = sphi %s4206_s30, %s5084_s30   ;;  %s4084_s29 = sphi %s4204_s29, %s5083_s29  }
  0x16   : > { %5040 = sst [smem:[#allocation14_spill]] %s4092_s15  ;;  %s39_s22 = sadd.s32 1, %s4104_s18 }
  0x17   : > { %5041 = sst [smem:[#allocation15_spill]] %s4104_s18  ;;  %p40_p0 = scmp.ge.s32.totalorder %s39_s22, 2 }
  0x18   : > { %5042 = sst [smem:[#allocation16_spill]] %s4108_s19  ;;  %s42_s23 = sadd.s32 1, %s4108_s19 }
  0x19   : > { %5043 = sst [smem:[#allocation17_spill]] %s4112_s20  ;;  %s127_s24 = sadd.s32 1, %s4092_s15 }
  0x1a   : > { %p134_p1 = scmp.ne.s32.totalorder %s4092_s15, %s4088_s30  ;;  %s5091_s22 = smov (%p40_p0, %s39_s22), 0 }
  0x1b   : > { %5044 = sst [smem:[#allocation18_spill]] %s5091_s22  ;;  %s5093_s23 = smov (!%p40_p0, %s42_s23), %s4108_s19 }
  0x1c   : > { %s124_s25 = ssub.s32 %s4104_s18, %s5091_s22  ;;  %p135_p2 = scmp.eq.s32.totalorder %s4112_s20, 0 }
  0x1d   : > { %p44_p3 = scmp.ge.s32.totalorder %s5093_s23, 2  ;;  %p125_p4 = scmp.eq.s32.totalorder %s124_s25, 0 }
  0x1e   : > { %p136_p5 = por %p135_p2, %p134_p1  ;;  %p140_p6 = scmp.ne.s32.totalorder %s4088_s30, %s4084_s29 }
  0x1f   : > { %s5095_s23 = smov (%p44_p3, %s5093_s23), 0  ;;  %p141_p7 = scmp.eq.s32.totalorder %s5017_s21, 0 }
  0x20   : > { %5045 = sst [smem:[#allocation19_spill]] %s5095_s23  ;;  %p3736_p8 = scmp.lt.s32.totalorder %s4112_s20, 4 }
  0x21   : > { %s4258_s26 = scalar_select %p125_p4, %s4092_s15, %s127_s24  }
  0x22   : > { %s4264_s27 = sand.u32 1, %s4092_s15   ;;  %p4266_p9 = por %p141_p7, %p140_p6 }
  0x23   : > { %5046 = sst [smem:[#allocation20_spill]] %s4258_s26  ;;  %s484_s22 = sand.u32 1, %s4112_s20  }
  0x24   : > { %s5047_s28 = scalar_select %p4266_p9, 1, 0 }
  0x25   : > { %p4271_p10 = pnand %p3736_p8, %p136_p5  ;;  %s5020_s29 = sshll.u32 %s4264_s27, 7 }
  0x26   : > { %s5021_s24 = sshll.u32 %s4104_s18, 11  ;;  %s5049_s8 = sld [smem:[#allocation27_spill]] }
  0x27   : > { %s488_s26 = scalar_lea.vmem [#allocation6], %s5020_s29  ;;  %s4288_s1 = scalar_lea.sflag [#allocation7], %s484_s22 }
  0x28   : > { %s495_s15 = sshll.u32 %s488_s26, 4  ;;  %p4294_p12 = pneg %p4271_p10  ;;  %s4286_s15 = int_to_ptr.vmem [resolvable:$true] %s495_s15 }
  0x2c   : > { %s4282_s19 = scalar_lea.hbm %s5049_s8, %s5021_s24  ;;  %s3955_s29 = scalar_lea.hbm %s5049_s8, 4096 }
  0x2d   : > { %s3950_s13 = scalar_lea.hbm %s4282_s19, 2048  ;;  %p3956_p1 = scmp.lt.u32.totalorder %s4282_s19, %s5049_s8 }
  0x2e   : > { %p3951_p11 = scmp.ne.s32.totalorder %s4282_s19, %s3950_s13  ;;  %p3957_p2 = scmp.lt.u32.totalorder %s3955_s29, %s3950_s13 }
  0x2f   : > { %p3959_p4 = scmp.lt.u32.totalorder %s3950_s13, %s4282_s19 }
  0x30   : > { %p3953_p13 = pnand %p4294_p12, %p3951_p11  ;;  %p3958_p3 = por %p3957_p2, %p3956_p1 }
  0x32   : > { %p3954_p0 = pneg %p3953_p13  ;;  %p3960_p5 = por %p3959_p4, %p3958_p3 }
  0x34   : > { %p3961_p6 = pnand %p3960_p5, %p3954_p0 }
  0x36   : > { %3964 = shalt.err (!%p3961_p6)
}
  0x37   : > { %s3965_s22 = scalar_lea.vmem %s4286_s15, 2048  ;;  %s4114_s21 = smov [#allocation6]  }
  0x38   : > { %p3966_p7 = scmp.ne.s32.totalorder %s4286_s15, %s3965_s22  ;;  %s3970_s23 = sshll.u32 %s4114_s21, 4  ;;  %s3971_s23 = int_to_ptr.vmem [resolvable:$false] %s3970_s23 }
  0x39   : > { %s3972_s24 = scalar_lea.vmem %s3971_s23, 4096  ;;  %p3973_p13 = scmp.lt.s32.totalorder %s4286_s15, %s3971_s23 }
  0x3a   : > { %p3968_p8 = pnand %p3966_p7, %p4294_p12  ;;  %p3974_p9 = scmp.lt.s32.totalorder %s3972_s24, %s3965_s22 }
  0x3c   : > { %p3969_p11 = pneg %p3968_p8  ;;  %p3975_p1 = por %p3974_p9, %p3973_p13 }
  0x3e   : > { %p3976_p2 = pnand %p3975_p1, %p3969_p11 }
  0x40   : > { %3979 = shalt.err (!%p3976_p2)
}
  0x41   : > { %s4115_s13 = smov 128   ;;  %s4116_s29 = smov 8  }
  0x42   : > { %3732 = dma.hbm_to_vmem [thread:$0]  (!%p4271_p10), %s4282_s19, 2048, %s4286_s15, %s4288_s1, %s4115_s13, %s4115_s13, %s4116_s29  }
  0x43   : > { %s5051_s26 = sshll.u32 %s4104_s18, 11  ;;  %s5052_s10 = sld [smem:[#allocation29_spill]] }
  0x44   : > { %s5053_s24 = sshll.u32 %s4264_s27, 7  ;;  %p3465_p9 = scmp.ge.s32.totalorder %s4112_s20, 1 }
  0x45   : > { %s516_s8 = scalar_lea.vmem [#allocation8], %s5053_s24  ;;  %p549_p0 = scmp.lt.s32.totalorder %s4112_s20, 5 }
  0x46   : > { %s523_s11 = sshll.u32 %s516_s8, 4  ;;  %s3456_s3 = sshll.u32 %s4264_s27, 6  ;;  %s4327_s11 = int_to_ptr.vmem [resolvable:$true] %s523_s11 }
  0x47   : > { %p4331_p3 = pnand %p3465_p9, %p549_p0  ;;  %s3571_s15 = sshll.u32 %s4104_s18, 10 }
  0x48   : > { %s5055_s4 = sld [smem:[#allocation24_spill]]  ;;  %s449_s8 = scalar_lea.vmem [#allocation4], %s3456_s3 }
  0x49   : > { %s4323_s23 = scalar_lea.hbm %s5052_s10, %s5051_s26  ;;  %s456_s26 = sshll.u32 %s449_s8, 4  ;;  %s4342_s26 = int_to_ptr.vmem [resolvable:$true] %s456_s26 }
  0x4a   : > { %s5054_s9 = scalar_select %p4331_p3, 1, 0 }
  0x4b   : > { %s446_s22 = scalar_lea.sflag [#allocation5], %s4264_s27 }
  0x4e   : > { %s4340_s29 = scalar_lea.hbm %s5055_s4, %s3571_s15  ;;  %s3985_s19 = scalar_lea.hbm %s5055_s4, 2048 }
  0x4f   : > { %s3980_s21 = scalar_lea.hbm %s4340_s29, 1024  ;;  %p3986_p7 = scmp.lt.u32.totalorder %s4340_s29, %s5055_s4 }
  0x50   : > { %p3981_p4 = scmp.ne.s32.totalorder %s4340_s29, %s3980_s21  ;;  %p3987_p8 = scmp.lt.u32.totalorder %s3985_s19, %s3980_s21 }
  0x51   : > { %p3989_p13 = scmp.lt.u32.totalorder %s3980_s21, %s4340_s29 }
  0x52   : > { %p3983_p5 = pnand %p3981_p4, %p4294_p12  ;;  %p3988_p11 = por %p3987_p8, %p3986_p7 }
  0x54   : > { %p3984_p6 = pneg %p3983_p5  ;;  %p3990_p1 = por %p3989_p13, %p3988_p11 }
  0x56   : > { %p3991_p2 = pnand %p3990_p1, %p3984_p6 }
  0x58   : > { %3994 = shalt.err (!%p3991_p2)
}
  0x59   : > { %s3995_s3 = scalar_lea.vmem %s4342_s26, 1024  ;;  %s4117_s18 = smov [#allocation4]  }
  0x5a   : > { %p3996_p9 = scmp.ne.s32.totalorder %s4342_s26, %s3995_s3  ;;  %s4000_s8 = sshll.u32 %s4117_s18, 4  ;;  %s4001_s8 = int_to_ptr.vmem [resolvable:$false] %s4000_s8 }
  0x5b   : > { %s4002_s24 = scalar_lea.vmem %s4001_s8, 2048  ;;  %p4003_p5 = scmp.lt.s32.totalorder %s4342_s26, %s4001_s8 }
  0x5c   : > { %p3998_p0 = pnand %p3996_p9, %p4294_p12  ;;  %p4004_p3 = scmp.lt.s32.totalorder %s4002_s24, %s3995_s3 }
  0x5e   : > { %p3999_p4 = pneg %p3998_p0  ;;  %p4005_p7 = por %p4004_p3, %p4003_p5 }
  0x60   : > { %p4006_p8 = pnand %p4005_p7, %p3999_p4 }
  0x62   : > { %4009 = shalt.err (!%p4006_p8)
}
  0x63   : > { %s4118_s21 = smov 64   ;;  %s4119_s19 = smov 4  }
  0x64   : > { %3729 = dma.hbm_to_vmem [thread:$0]  (!%p4271_p10), %s4340_s29, 1024, %s4342_s26, %s446_s22, %s4118_s21, %s4118_s21, %s4119_s19  }
  0x65   : > { %s4010_s15 = scalar_lea.hbm %s4323_s23, 2048  ;;  %s4015_s18 = scalar_lea.hbm %s5052_s10, 4096 }
  0x66   : > { %p4011_p3 = scmp.ne.s32.totalorder %s4323_s23, %s4010_s15  ;;  %p4016_p13 = scmp.lt.u32.totalorder %s4323_s23, %s5052_s10 }
  0x67   : > { %p4017_p1 = scmp.lt.u32.totalorder %s4015_s18, %s4010_s15  ;;  %p4019_p9 = scmp.lt.u32.totalorder %s4010_s15, %s4323_s23 }
  0x68   : > { %p4013_p6 = pnand %p4011_p3, %p4294_p12 }
  0x69   : > { %p4018_p2 = por %p4017_p1, %p4016_p13 }
  0x6a   : > { %p4014_p11 = pneg %p4013_p6 }
  0x6b   : > { %p4020_p0 = por %p4019_p9, %p4018_p2 }
  0x6d   : > { %p4021_p4 = pnand %p4020_p0, %p4014_p11 }
  0x6f   : > { %4024 = shalt.err (!%p4021_p4)
}
  0x70   : > { %s4025_s27 = scalar_lea.vmem %s4327_s11, 2048  ;;  %s4120_s29 = smov [#allocation8]  }
  0x71   : > { %p4026_p5 = scmp.ne.s32.totalorder %s4327_s11, %s4025_s27  ;;  %s4030_s26 = sshll.u32 %s4120_s29, 4  ;;  %s4031_s26 = int_to_ptr.vmem [resolvable:$false] %s4030_s26 }
  0x72   : > { %s4032_s22 = scalar_lea.vmem %s4031_s26, 4096  ;;  %p4033_p3 = scmp.lt.s32.totalorder %s4327_s11, %s4031_s26 }
  0x73   : > { %p4028_p7 = pnand %p4026_p5, %p4294_p12  ;;  %p4034_p6 = scmp.lt.s32.totalorder %s4032_s22, %s4025_s27 }
  0x75   : > { %p4029_p8 = pneg %p4028_p7  ;;  %p4035_p13 = por %p4034_p6, %p4033_p3 }
  0x77   : > { %p4036_p1 = pnand %p4035_p13, %p4029_p8 }
  0x79   : > { %4039 = shalt.err (!%p4036_p1)
}
  0x7a   : > { %3735 = dma.hbm_to_vmem [thread:$0]  (!%p4271_p10), %s4323_s23, 2048, %s4327_s11, %s4288_s1, %s4118_s21, %s4118_s21, %s4119_s19  }
  0x7b   : > { %p5056_p12 = scmp.ne.s32.totalorder %s5054_s9, 0 }
  0x7c   : > { %s4399_s12 = sand.u32 (!%p5056_p12), 1, %s4088_s30   ;;  %p5057_p11 = scmp.ne.s32.totalorder (!%p5056_p12), %s5047_s28, 0 }
  0x7d   : > { %553 = sbr.rel (%p5056_p12) target bundleno = 2808 (0xaf8), region = 72  ;;  %s3466_s15 = sshll.u32 (!%p5056_p12), %s4399_s12, 6 }
  0x7e   : > { %s556_s13 = scalar_lea.sflag (!%p5056_p12), [#allocation5], %s4399_s12  ;;  %s4403_s3 = scalar_lea.vmem (!%p5056_p12), [#allocation4], %s3466_s15 }
  0x84   : > { %4073 = dma.done.wait (%p5057_p11), %s556_s13, 1024  }
  0x85   : > { %4075 = vsyncadd (%p5057_p11), %s556_s13, 4294966272  ;;  %s5058_s1 = sadd.s32 4294967295, %s4112_s20   ;;  %s3467_s11 = sshll.u32 %s4399_s12, 7 }
  0x86   : > { %s564_s9 = sand.u32 1, %s5058_s1   ;;  %s4412_s23 = scalar_lea.vmem [#allocation6], %s3467_s11 }
  0x87   : > { %s565_s25 = scalar_lea.sflag [#allocation7], %s564_s9 }
  0x88   : > { %4077 = dma.done.wait (%p5057_p11), %s565_s25, 4096  }
  0x89   : > { %4079 = vsyncadd (%p5057_p11), %s565_s25, 4294963200  ;;  %p662_p10 = scmp.lt.s32.totalorder %s4100_s17, 1  ;;  %p665_p2 = scmp.lt.s32.totalorder %s4096_s16, 1 }
  0x8a   : > { %s5061_s2 = sld [smem:[#allocation22_spill]]  ;;  %s5063_s30 = sld [smem:[#allocation23_spill]] }
  0x8b   : > { %s4421_s21 = scalar_select %p662_p10, %s4100_s17, 1 }
  0x8c   : > { %s4424_s19 = scalar_select %p665_p2, %s4096_s16, 1 }
  0x8d   : > { %s5064_s14 = sld [smem:[#allocation28_spill]]  ;;  %s5065_s18 = sld [smem:[#allocation30_spill]] }
  0x8e   : > { %s3718_s26 = smul.u32 192, %s4424_s19  ;;  %s3470_s22 = sshll.u32 %s4424_s19, 1 }
  0x8f   : > { %s3719_s13 = smul.u32 3, %s4424_s19  ;;  %s5066_s6 = sld [smem:[#allocation31_spill]] }
  0x90   : > { %s4447_s4 = scalar_lea.vmem %s5061_s2, %s3718_s26  ;;  %s5067_s7 = sld [smem:[#allocation32_spill]] }
  0x91   : > { %s4456_s20 = scalar_lea.vmem %s5063_s30, %s3719_s13  ;;  %s4476_s30 = scalar_lea.vmem [#allocation8], %s3467_s11 }
  0x92   : > { %p3471_p9 = scmp.ne.s32.totalorder %s4096_s16, 0 }
  0x93   : > { %s4462_s1 = scalar_lea.vmem %s5064_s14, %s3470_s22  ;;  %s689_s26 = scalar_lea.vmem %s5065_s18, %s4424_s19 }
  0x94   : > { %703 = sbr.rel (%p3471_p9) target bundleno = 161 (0xa1), region = 88  ;;  %s3472_s14 = sshll.u32 (!%p3471_p9), %s4100_s17, 4 }
  0x95   : > { %s692_s10 = scalar_lea.vmem %s5066_s6, %s4424_s19  ;;  %s5068_s27 = sld [smem:[#allocation21_spill]] (!%p3471_p9) }
  0x96   : > { %s695_s29 = scalar_lea.vmem %s5067_s7, %s4424_s19 }
  0x9b   : > { %s705_s25 = scalar_lea.vmem %s5068_s27, %s3472_s14 }
  0x9c   : > { %v738_v0 = vld [vmem:[%s705_s25] sm:$0xff]  ;;  %v740_v1 = vld [vmem:[%s705_s25 + $0x8] sm:$0xff] }
  0x9d   : > { %739 = vst [vmem:[#allocation2] sm:$0xff] %v738_v0  ;;  %741 = vst [vmem:[#allocation2 + $0x8] sm:$0xff] %v740_v1 }
  0x9e   : > { %749 = vsyncadd [#allocation3], 256 }
  0x9f   : > { %4080 = dma.done.wait [#allocation3], 256 }
  0xa0   : > { %4081 = vsyncadd [#allocation3], 4294967040 }
  0xa1 PF: > { %v3828_v2 = vld [vmem:[%s4447_s4 + $0x4] ss:$12 sps:$4 sm:$0xff]   ;;  %v3830_v3 = vld [vmem:[%s4447_s4] ss:$12 sps:$4 sm:$0xff]   ;;  %v4121_v4 = vmov 0   ;;  %v4122_v23 = vmov 0.0   ;;  %v790_v24 = vlaneseq  ;;  %s5072_s24 = scalar_lea.vmem %s5006_s5, %s4424_s19 }
  0xa2   : > { %965 = vmatprep.mubr.bf16.mxu0 %v4121_v4  ;;  %933 = vmatprep.subr.bf16.mxu0 %v3828_v2  ;;  %v3831_v5 = vld [vmem:[%s4447_s4 + $0x1c] ss:$12 sps:$4 sm:$0xff]   ;;  %v3833_v6 = vld [vmem:[%s4447_s4 + $0x18] ss:$12 sps:$4 sm:$0xff]   ;;  %v3834_v7 = vld [vmem:[%s4447_s4 + $0x34] ss:$12 sps:$4 sm:$0xff]  }
  0xa3   : > { %934 = vmatpush1.bf16.msra.mxu0 %v3830_v3  ;;  %v3836_v8 = vld [vmem:[%s4447_s4 + $0x30] ss:$12 sps:$4 sm:$0xff]   ;;  %v3837_v9 = vld [vmem:[%s4447_s4 + $0x4c] ss:$12 sps:$4 sm:$0xff]   ;;  %v3839_v10 = vld [vmem:[%s4447_s4 + $0x48] ss:$12 sps:$4 sm:$0xff]   ;;  %3630 = vmatprep.subr.bf16.mxu1 %v4122_v23 }
  0xa4   : > { %935 = vmatprep.subr.bf16.mxu0 %v3831_v5  ;;  %v3840_v11 = vld [vmem:[%s4447_s4 + $0x64] ss:$12 sps:$4 sm:$0xff]   ;;  %v3842_v12 = vld [vmem:[%s4447_s4 + $0x60] ss:$12 sps:$4 sm:$0xff]   ;;  %v3843_v13 = vld [vmem:[%s4447_s4 + $0x7c] ss:$12 sps:$4 sm:$0xff]  }
  0xa5   : > { %v3845_v14 = vld [vmem:[%s4447_s4 + $0x78] ss:$12 sps:$4 sm:$0xff]   ;;  %v3846_v15 = vld [vmem:[%s4447_s4 + $0x94] ss:$12 sps:$4 sm:$0xff]   ;;  %v3848_v16 = vld [vmem:[%s4447_s4 + $0x90] ss:$12 sps:$4 sm:$0xff]  }
  0xa6   : > { %v3849_v17 = vld [vmem:[%s4447_s4 + $0xac] ss:$12 sps:$4 sm:$0xff]   ;;  %v3851_v18 = vld [vmem:[%s4447_s4 + $0xa8] ss:$12 sps:$4 sm:$0xff]   ;;  %v753_v19 = vld [vmem:[#allocation2] sm:$0xff]  ;;  %v4508_v26 = vshrl.u32 %v790_v24, 7 }
  0xa7   : > { %936 = vmatpush1.bf16.msra.mxu0 %v3833_v6  ;;  %v754_v20 = vld [vmem:[#allocation2 + $0x8] sm:$0xff]  ;;  %v3854_v27 = vld [vmem:[%s4447_s4 + $0x38] ss:$12 sps:$4 sm:$0xff]   ;;  %v4514_v29 = vld [vmem:[%s4456_s20] sm:$0x7]  ;;  %s4123_s2 = smov 64   ;;  %s5069_s20 = scalar_lea.vmem %s5001_s0, %s4421_s21 }
  0xa8   : > { %937 = vmatprep.subr.bf16.mxu0 %v3834_v7  ;;  %v4500_v21 = vpack.c.bf16 %v754_v20, %v753_v19  ;;  %v3852_v22 = vld [vmem:[%s4447_s4 + $0x8] ss:$12 sps:$4 sm:$0xff]   ;;  %v3853_v25 = vld [vmem:[%s4447_s4 + $0x20] ss:$12 sps:$4 sm:$0xff]   ;;  %v796_v28 = vsub.s32 1, %v4508_v26  ;;  %v4519_v31 = vsub.s32 0, %v4508_v26 }
  0xa9   : > { %3631 = vmatpush3.bf16.msra.mxu1 %v3852_v22  ;;  %v3855_v30 = vld [vmem:[%s4447_s4 + $0x50] ss:$12 sps:$4 sm:$0xff]   ;;  %v3856_v38 = vld [vmem:[%s4447_s4 + $0x68] ss:$12 sps:$4 sm:$0xff]   ;;  %s4124_s6 = smov 96   ;;  %s4125_s7 = smov 32  }
  0xaa   : > { %3632 = vmatprep.subr.bf16.mxu1 %v4122_v23  ;;  %v797_v32 = vrot.slane %v4514_v29, %v796_v28  ;;  %v793_v35 = vrot.slane %v4514_v29, %v4519_v31  ;;  %v3857_v42 = vld [vmem:[%s4447_s4 + $0x80] ss:$12 sps:$4 sm:$0xff]   ;;  %v3858_v45 = vld [vmem:[%s4447_s4 + $0x98] ss:$12 sps:$4 sm:$0xff]   ;;  %v3859_v47 = vld [vmem:[%s4447_s4 + $0xb0] ss:$12 sps:$4 sm:$0xff]  }
  0xab   : > { %938 = vmatpush1.bf16.msra.mxu0 %v3836_v8  ;;  %vm4126_vm0 = vmmov 0   ;;  %v4127_v48 = vmov 1983009808   ;;  %v4128_v50 = vmov 1934713408   ;;  %vm1909_vm1 = vcmask 261120  }
  0xac   : > { %939 = vmatprep.subr.bf16.mxu0 %v3837_v9  ;;  %3646 = vmatprep.mubr.msk.bf16.mxu1 %vm4126_vm0, %v4122_v23  ;;  %v1044_v49 = vunpack.c.l.s4 %v4127_v48  ;;  %v1076_v51 = vunpack.c.l.s4 %v4128_v50  ;;  %vm2112_vm4 = vcmask 130048   ;;  %vm2679_vm5 = vcmask 523264   ;;  %s5073_s12 = sld [smem:[#allocation25_spill]]  ;;  %s5075_s28 = sld [smem:[#allocation26_spill]] }
  0xad   : > { %3633 = vmatpush3.bf16.msra.mxu1 %v3853_v25  ;;  %vm2682_vm6 = vcmask 785408   ;;  %p3567_p0 = scmp.ne.s32.totalorder %s4096_s16, 1 }
  0xae   : > { %3634 = vmatprep.subr.bf16.mxu1 %v4122_v23  ;;  %v1045_v52 = vunpack.c.0.s8 %v1044_v49  ;;  %v1077_v55 = vunpack.c.0.s8 %v1076_v51 }
  0xaf   : > { %940 = vmatpush1.bf16.msra.mxu0 %v3839_v10 }
  0xb0   : > { %941 = vmatprep.subr.bf16.mxu0 %v3840_v11  ;;  %v4570_v56 = vsub.s32 %v1045_v52, %v4508_v26  ;;  %v4573_v63 = vsub.s32 %v1077_v55, %v4508_v26 }
  0xb1   : > { %3635 = vmatpush3.bf16.msra.mxu1 %v3854_v27 }
  0xb2   : > { %3636 = vmatprep.subr.bf16.mxu1 %v4122_v23  ;;  %s5074_s9 = scalar_lea.vmem %s5073_s12, %s4424_s19  ;;  %s5076_s14 = scalar_lea.vmem %s5075_s28, %s4424_s19 }
  0xb3   : > { %942 = vmatpush1.bf16.msra.mxu0 %v3842_v12 }
  0xb4   : > { %943 = vmatprep.subr.bf16.mxu0 %v3843_v13 }
  0xb5   : > { %3637 = vmatpush3.bf16.msra.mxu1 %v3855_v30 }
  0xb6   : > { %3638 = vmatprep.subr.bf16.mxu1 %v4122_v23 }
  0xb7   : > { %944 = vmatpush1.bf16.msra.mxu0 %v3845_v14 }
  0xb8   : > { %945 = vmatprep.subr.bf16.mxu0 %v3846_v15 }
  0xb9   : > { %3639 = vmatpush3.bf16.msra.mxu1 %v3856_v38 }
  0xba   : > { %3640 = vmatprep.subr.bf16.mxu1 %v4122_v23 }
  0xbb   : > { %946 = vmatpush1.bf16.msra.mxu0 %v3848_v16 }
  0xbc   : > { %947 = vmatprep.subr.bf16.mxu0 %v3849_v17 }
  0xbd   : > { %3641 = vmatpush3.bf16.msra.mxu1 %v3857_v42 }
  0xbe   : > { %3642 = vmatprep.subr.bf16.mxu1 %v4122_v23 }
  0xbf   : > { %948 = vmatpush1.bf16.msra.mxu0 %v3851_v18 }
  0xc0   : > { %3674 = vmatprep.subr.bf16.mxu0 %v4122_v23 }
  0xc1   : > { %3643 = vmatpush3.bf16.msra.mxu1 %v3858_v45 }
  0xc2   : > { %966 = vmatmul.mubr.bf16.vlgmr.msra.gmra.mrb[0].mxu0 %v4500_v21  ;;  %3644 = vmatprep.subr.bf16.mxu1 %v4122_v23 }
  0xc3   : > { %3676 = vmatprep.mubr.msk.bf16.mxu0 %vm4126_vm0, %v4122_v23 }
  0xc5   : > { %3645 = vmatpush3.bf16.msra.mxu1 %v3859_v47 }
  0xc6   : > { %3650 = vmatprep.subr.bf16.mxu1 %v4122_v23 }
  0xc8   : > { %3647 = vmatmul.mubr.bf16.vlgmr.msra.gmra.mrb[0].mxu1 %v4500_v21 }
  0xc9   : > { %3652 = vmatprep.mubr.msk.bf16.mxu1 %vm4126_vm0, %v4122_v23 }
 0x195   : > { %v967_v33 = vpop.f32.mrb[0].mxu0 }
 0x196   : > { %v969_v34 = vpop.f32.mrb[1].mxu0  ;;  %v968_v40 = vadd.f32 %v967_v33, %v793_v35 }
 0x197   : > { %v970_v36 = vadd.f32 %v969_v34, %v797_v32  ;;  %v971_v37 = vpop.f32.mrb[2].mxu0 }
 0x198   : > { %v973_v39 = vpop.f32.mrb[3].mxu0  ;;  %v4537_v43 = vmul.f32 0.17677669, %v968_v40  ;;  %v972_v44 = vadd.f32 %v971_v37, %v793_v35 }
 0x199   : > { %1325 = vrot.lane.b32.xlu1 %v970_v36, %s4123_s2  ;;  %1319 = vrot.lane.b32.xlu0 %v970_v36, %s4124_s6  ;;  %v4530_v41 = vadd.f32 %v973_v39, %v797_v32 }
 0x19a   : > { %v4545_v46 = vmul.f32 0.17677669, %v972_v44 }
 0x19d   : > { %1327 = vrot.lane.b32.xlu1 %v4530_v41, %s4123_s2  ;;  %1331 = vrot.lane.b32.xlu0 %v970_v36, %s4125_s7 }
 0x1a1   : > { %1333 = vrot.lane.b32.xlu1 %v4530_v41, %s4125_s7  ;;  %1023 = vrot.lane.b32.xlu0 %v4537_v43, %s4124_s6 }
 0x1a5   : > { %1025 = vrot.lane.b32.xlu1 %v4545_v46, %s4124_s6  ;;  %1321 = vrot.lane.b32.xlu0 %v4530_v41, %s4124_s6 }
 0x1a9   : > { %1031 = vrot.lane.b32.xlu1 %v4545_v46, %s4123_s2  ;;  %1029 = vrot.lane.b32.xlu0 %v4537_v43, %s4123_s2 }
 0x1ad   : > { %1037 = vrot.lane.b32.xlu1 %v4545_v46, %s4125_s7  ;;  %1035 = vrot.lane.b32.xlu0 %v4537_v43, %s4125_s7 }
 0x20b   : > { %v1326_v53 = vpop.permute.xlu1 %1325  ;;  %v1320_v54 = vpop.permute.xlu0 %1319 }
 0x20c   : > { %v1337_v57 = vcombine.low %v970_v36, %v1326_v53  ;;  %v1338_v58 = vcombine.high %v970_v36, %v1326_v53 }
 0x20e   : > { %v1345_v0 = vrot.slane %v1337_v57, %v4570_v56  ;;  %v1352_v1 = vrot.slane %v1338_v58, %v4570_v56 }
 0x20f   : > { %v1328_v59 = vpop.permute.xlu1 %1327  ;;  %v1332_v60 = vpop.permute.xlu0 %1331 }
 0x210   : > { %v1353_v61 = vcombine.low %v1320_v54, %v1332_v60  ;;  %v1354_v62 = vcombine.high %v1320_v54, %v1332_v60  ;;  %v1405_v15 = vcombine.low %v4530_v41, %v1328_v59  ;;  %v1406_v16 = vcombine.high %v4530_v41, %v1328_v59 }
 0x212   : > { %v1361_v2 = vrot.slane %v1353_v61, %v4570_v56  ;;  %v1368_v3 = vrot.slane %v1354_v62, %v4570_v56  ;;  %v1413_v27 = vrot.slane %v1405_v15, %v4570_v56  ;;  %v1420_v30 = vrot.slane %v1406_v16, %v4570_v56 }
 0x213   : > { %v1334_v5 = vpop.permute.xlu1 %1333  ;;  %v1024_v6 = vpop.permute.xlu0 %1023 }
 0x214   : > { %v1369_v7 = vcombine.low %v1345_v0, %v1361_v2  ;;  %v1370_v8 = vcombine.high %v1345_v0, %v1361_v2  ;;  %v1385_v9 = vcombine.low %v1352_v1, %v1368_v3  ;;  %v1386_v10 = vcombine.high %v1352_v1, %v1368_v3 }
 0x216   : > { %v1377_v11 = vrot.slane %v1369_v7, %v4573_v63  ;;  %v1384_v12 = vrot.slane %v1370_v8, %v4573_v63  ;;  %v1393_v13 = vrot.slane %v1385_v9, %v4573_v63  ;;  %v1400_v14 = vrot.slane %v1386_v10, %v4573_v63 }
 0x217   : > { %v1026_v17 = vpop.permute.xlu1 %1025  ;;  %v1322_v18 = vpop.permute.xlu0 %1321 }
 0x218   : > { %v1421_v19 = vcombine.low %v1322_v18, %v1334_v5  ;;  %v1422_v20 = vcombine.high %v1322_v18, %v1334_v5  ;;  %v1473_v21 = vcombine.low %v1377_v11, %v1384_v12  ;;  %v3501_v22 = vcombine.high %v1377_v11, %v1384_v12 }
 0x219   : > { %v1489_v24 = vcombine.low %v1393_v13, %v1400_v14  ;;  %v3502_v25 = vcombine.high %v1393_v13, %v1400_v14 }
 0x21a   : > { %v1429_v32 = vrot.slane %v1421_v19, %v4570_v56  ;;  %v1436_v33 = vrot.slane %v1422_v20, %v4570_v56  ;;  %v4594_v45 = vrot.slane %v1473_v21, %v4570_v56  ;;  %v4597_v47 = vrot.slane %v3501_v22, %v4570_v56 }
 0x21b   : > { %v1032_v34 = vpop.permute.xlu1 %1031  ;;  %v1030_v35 = vpop.permute.xlu0 %1029  ;;  %v4600_v48 = vrot.slane %v1489_v24, %v4570_v56  ;;  %v4603_v49 = vrot.slane %v3502_v25, %v4570_v56 }
 0x21c   : > { %v1109_v36 = vcombine.low %v4545_v46, %v1032_v34  ;;  %v1110_v37 = vcombine.high %v4545_v46, %v1032_v34  ;;  %v1041_v38 = vcombine.low %v4537_v43, %v1030_v35  ;;  %v1042_v39 = vcombine.high %v4537_v43, %v1030_v35 }
 0x21d   : > { %v1437_v40 = vcombine.low %v1413_v27, %v1429_v32  ;;  %v1438_v41 = vcombine.high %v1413_v27, %v1429_v32  ;;  %v1453_v42 = vcombine.low %v1420_v30, %v1436_v33  ;;  %v1454_v44 = vcombine.high %v1420_v30, %v1436_v33 }
 0x21e   : > { %v1117_v59 = vrot.slane %v1109_v36, %v4570_v56  ;;  %v1124_v60 = vrot.slane %v1110_v37, %v4570_v56  ;;  %v1049_v61 = vrot.slane %v1041_v38, %v4570_v56  ;;  %v1056_v62 = vrot.slane %v1042_v39, %v4570_v56 }
 0x21f   : > { %v1445_v46 = vrot.slane %v1437_v40, %v4573_v63  ;;  %v1452_v43 = vrot.slane %v1438_v41, %v4573_v63  ;;  %v1461_v50 = vrot.slane %v1453_v42, %v4573_v63  ;;  %v1468_v51 = vrot.slane %v1454_v44, %v4573_v63  ;;  %v1038_v52 = vpop.permute.xlu1 %1037  ;;  %v1036_v53 = vpop.permute.xlu0 %1035 }
 0x220   : > { %v1125_v54 = vcombine.low %v1026_v17, %v1038_v52  ;;  %v1126_v55 = vcombine.high %v1026_v17, %v1038_v52  ;;  %v1057_v57 = vcombine.low %v1024_v6, %v1036_v53  ;;  %v1058_v58 = vcombine.high %v1024_v6, %v1036_v53 }
 0x221   : > { %v1541_v5 = vcombine.low %v1445_v46, %v1452_v43  ;;  %v3503_v7 = vcombine.high %v1445_v46, %v1452_v43  ;;  %v1557_v8 = vcombine.low %v1461_v50, %v1468_v51  ;;  %v3504_v6 = vcombine.high %v1461_v50, %v1468_v51 }
 0x222   : > { %v1133_v0 = vrot.slane %v1125_v54, %v4570_v56  ;;  %v1140_v1 = vrot.slane %v1126_v55, %v4570_v56  ;;  %v1065_v2 = vrot.slane %v1057_v57, %v4570_v56  ;;  %v1072_v3 = vrot.slane %v1058_v58, %v4570_v56 }
 0x223   : > { %v1548_v50 = vrot.slane %v1541_v5, %v4570_v56  ;;  %v1556_v51 = vrot.slane %v3503_v7, %v4570_v56  ;;  %v1564_v52 = vrot.slane %v1557_v8, %v4570_v56  ;;  %v1572_v53 = vrot.slane %v3504_v6, %v4570_v56 }
 0x224   : > { %v1141_v9 = vcombine.low %v1117_v59, %v1133_v0  ;;  %v1142_v10 = vcombine.high %v1117_v59, %v1133_v0  ;;  %v1157_v11 = vcombine.low %v1124_v60, %v1140_v1  ;;  %v1158_v12 = vcombine.high %v1124_v60, %v1140_v1 }
 0x225   : > { %v1073_v13 = vcombine.low %v1049_v61, %v1065_v2  ;;  %v1074_v14 = vcombine.high %v1049_v61, %v1065_v2  ;;  %v1089_v15 = vcombine.low %v1056_v62, %v1072_v3  ;;  %v1090_v16 = vcombine.high %v1056_v62, %v1072_v3 }
 0x226   : > { %v1149_v17 = vrot.slane %v1141_v9, %v4573_v63  ;;  %v1156_v18 = vrot.slane %v1142_v10, %v4573_v63  ;;  %v1165_v19 = vrot.slane %v1157_v11, %v4573_v63  ;;  %v1172_v20 = vrot.slane %v1158_v12, %v4573_v63 }
 0x227   : > { %v1081_v21 = vrot.slane %v1073_v13, %v4573_v63  ;;  %v1088_v22 = vrot.slane %v1074_v14, %v4573_v63  ;;  %v1097_v24 = vrot.slane %v1089_v15, %v4573_v63  ;;  %v1104_v25 = vrot.slane %v1090_v16, %v4573_v63 }
 0x228   : > { %v1245_v27 = vcombine.low %v1149_v17, %v1156_v18  ;;  %v3499_v30 = vcombine.high %v1149_v17, %v1156_v18  ;;  %v1261_v32 = vcombine.low %v1165_v19, %v1172_v20  ;;  %v3500_v33 = vcombine.high %v1165_v19, %v1172_v20 }
 0x229   : > { %v1177_v34 = vcombine.low %v1081_v21, %v1088_v22  ;;  %v3497_v35 = vcombine.high %v1081_v21, %v1088_v22  ;;  %v1193_v36 = vcombine.low %v1097_v24, %v1104_v25  ;;  %v3498_v37 = vcombine.high %v1097_v24, %v1104_v25 }
 0x22a   : > { %v4626_v38 = vrot.slane %v1245_v27, %v4570_v56  ;;  %v4629_v39 = vrot.slane %v3499_v30, %v4570_v56  ;;  %v4632_v40 = vrot.slane %v1261_v32, %v4570_v56  ;;  %v1276_v41 = vrot.slane %v3500_v33, %v4570_v56 }
 0x22b   : > { %v1184_v42 = vrot.slane %v1177_v34, %v4570_v56  ;;  %v1192_v44 = vrot.slane %v3497_v35, %v4570_v56  ;;  %v1200_v46 = vrot.slane %v1193_v36, %v4570_v56  ;;  %v1208_v43 = vrot.slane %v3498_v37, %v4570_v56 }
 0x22c   : > { %v1277_v54 = vcombine.low %v4626_v38, %v4629_v39  ;;  %v1293_v55 = vcombine.low %v4632_v40, %v1276_v41  ;;  %v1505_v59 = vcombine.low %v4594_v45, %v4597_v47  ;;  %v1521_v60 = vcombine.low %v4600_v48, %v4603_v49 }
 0x22d   : > { %v1209_v57 = vcombine.low %v1184_v42, %v1192_v44  ;;  %v1225_v58 = vcombine.low %v1200_v46, %v1208_v43  ;;  %v1573_v61 = vcombine.low %v1548_v50, %v1556_v51  ;;  %v1589_v62 = vcombine.low %v1564_v52, %v1572_v53 }
 0x22e   : > { %v1513_v0 = vrot.slane %v1505_v59, %v4573_v63  ;;  %v1529_v1 = vrot.slane %v1521_v60, %v4573_v63  ;;  %v1285_v5 = vrot.slane %v1277_v54, %v4573_v63  ;;  %v1301_v7 = vrot.slane %v1293_v55, %v4573_v63  ;;  %v1010_v59 = vpop.f32.mrb[0].mxu1 }
 0x22f   : > { %v1581_v2 = vrot.slane %v1573_v61, %v4573_v63  ;;  %v1597_v3 = vrot.slane %v1589_v62, %v4573_v63  ;;  %v1217_v8 = vrot.slane %v1209_v57, %v4573_v63  ;;  %v1233_v6 = vrot.slane %v1225_v58, %v4573_v63  ;;  %v3648_v60 = vpop.f32.mrb[1].mxu1 }
 0x230   : > { %v1537_v9 = vcombine.low %v1513_v0, %v1529_v1  ;;  %v1309_v13 = vcombine.low %v1285_v5, %v1301_v7  ;;  %v1574_v16 = vcombine.high %v1548_v50, %v1556_v51  ;;  %v1590_v17 = vcombine.high %v1564_v52, %v1572_v53  ;;  %v1013_v61 = vpop.f32.mrb[2].mxu1 }
 0x231   : > { %v1605_v10 = vcombine.low %v1581_v2, %v1597_v3  ;;  %v1241_v12 = vcombine.low %v1217_v8, %v1233_v6  ;;  %v1606_v15 = vcombine.high %v1581_v2, %v1597_v3  ;;  %v1538_v18 = vcombine.high %v1513_v0, %v1529_v1  ;;  %v3649_v62 = vpop.f32.mrb[3].mxu1  ;;  %v1017_v0 = vld [vmem:[%s5069_s20] sm:$0x1] }
 0x232   : > { %v1506_v19 = vcombine.high %v4594_v45, %v4597_v47  ;;  %v1522_v20 = vcombine.high %v4600_v48, %v4603_v49  ;;  %v1588_v24 = vrot.slane %v1574_v16, %v4573_v63  ;;  %v1604_v25 = vrot.slane %v1590_v17, %v4573_v63 }
 0x233   : > { %v1609_v11 = vpack.c.bf16 %v1605_v10, %v1537_v9  ;;  %v1313_v21 = vpack.c.bf16 %v1309_v13, %v1241_v12  ;;  %v1610_v22 = vpack.c.bf16 %v1606_v15, %v1538_v18  ;;  %v1278_v45 = vcombine.high %v4626_v38, %v4629_v39 }
 0x234   : > { %v1520_v27 = vrot.slane %v1506_v19, %v4573_v63  ;;  %v1536_v30 = vrot.slane %v1522_v20, %v4573_v63  ;;  %v1607_v33 = vcombine.low %v1588_v24, %v1604_v25  ;;  %v1294_v47 = vcombine.high %v4632_v40, %v1276_v41 }
 0x235   : > { %v1914_v14 = vsel %vm1909_vm1, %v1609_v11, 0  ;;  %v1961_v32 = vsel %vm1909_vm1, %v1610_v22, 0  ;;  %v1210_v48 = vcombine.high %v1184_v42, %v1192_v44  ;;  %v1226_v49 = vcombine.high %v1200_v46, %v1208_v43 }
 0x236   : > { %3651 = vmatpush3.bf16.xpose.msra.mxu1 %v1914_v14  ;;  %v1242_v34 = vcombine.high %v1217_v8, %v1233_v6  ;;  %v1310_v35 = vcombine.high %v1285_v5, %v1301_v7  ;;  %v1539_v36 = vcombine.low %v1520_v27, %v1536_v30  ;;  %v1292_v50 = vrot.slane %v1278_v45, %v4573_v63 }
 0x237   : > { %3656 = vmatprep.subr.bf16.mxu1 %v4122_v23  ;;  %v1308_v51 = vrot.slane %v1294_v47, %v4573_v63  ;;  %v1224_v38 = vrot.slane %v1210_v48, %v4573_v63  ;;  %v1240_v39 = vrot.slane %v1226_v49, %v4573_v63  ;;  %v1608_v42 = vcombine.high %v1588_v24, %v1604_v25 }
 0x238   : > { %v1611_v37 = vpack.c.bf16 %v1607_v33, %v1539_v36  ;;  %v1314_v40 = vpack.c.bf16 %v1310_v35, %v1242_v34  ;;  %v1540_v43 = vcombine.high %v1520_v27, %v1536_v30  ;;  %vm1018_vm2 = vcmp.gt.f32.partialorder %v1017_v0, 0.0 }
 0x239   : > { %v1243_v44 = vcombine.low %v1224_v38, %v1240_v39  ;;  %v1311_v46 = vcombine.low %v1292_v50, %v1308_v51  ;;  %v1244_v55 = vcombine.high %v1224_v38, %v1240_v39  ;;  %v1312_v57 = vcombine.high %v1292_v50, %v1308_v51 }
 0x23a   : > { %v2008_v41 = vsel %vm1909_vm1, %v1611_v37, 0  ;;  %v1612_v52 = vpack.c.bf16 %v1608_v42, %v1540_v43  ;;  %v2098_v1 = vsel %vm1018_vm2, 1, %v4121_v4  ;;  %v800_v50 = vsub.s32 2, %v4508_v26  ;;  %v3548_v26 = vld [vmem:[%s689_s26] ss:$0 sm:$0xff] }
 0x23b   : > { %v1315_v53 = vpack.c.bf16 %v1311_v46, %v1243_v44  ;;  %v1316_v58 = vpack.c.bf16 %v1312_v57, %v1244_v55  ;;  %v2102_v2 = vrot.slane %v2098_v1, %v4519_v31 }
 0x23c   : > { %v2055_v54 = vsel %vm1909_vm1, %v1612_v52, 0  ;;  %v801_v51 = vrot.slane %v4514_v29, %v800_v50 }
 0x23d   : > { %3653 = vmatmul.mubr.msk.bf16.vlgmr.msra.gmra.mrb[4].mxu1 %vm1909_vm1, %v1313_v21  ;;  %vm4700_vm3 = vcmp.eq.s32.totalorder %v2102_v2, 1 }
 0x23e   : > { %3657 = vmatpush3.bf16.xpose.msra.mxu1 %v1961_v32  ;;  %3658 = vmatprep.mubr.msk.bf16.mxu1 %vm4126_vm0, %v4122_v23  ;;  %v4733_v38 = vadd.f32 %v1010_v59, %v801_v51  ;;  %v4739_v39 = vadd.f32 %v1013_v61, %v801_v51 }
 0x23f   : > { %3662 = vmatprep.subr.bf16.mxu1 %v4122_v23 }
 0x245   : > { %3659 = vmatmul.mubr.msk.bf16.vlgmr.msra.gmra.mrb[8].mxu1 %vm1909_vm1, %v1314_v40 }
 0x246   : > { %3663 = vmatpush3.bf16.xpose.msra.mxu1 %v2008_v41  ;;  %3664 = vmatprep.mubr.msk.bf16.mxu1 %vm4126_vm0, %v4122_v23 }
 0x247   : > { %3668 = vmatprep.subr.bf16.mxu1 %v4122_v23 }
 0x24d   : > { %3665 = vmatmul.mubr.msk.bf16.vlgmr.msra.gmra.mrb[12].mxu1 %vm1909_vm1, %v1315_v53 }
 0x24e   : > { %3669 = vmatpush3.bf16.xpose.msra.mxu1 %v2055_v54  ;;  %3670 = vmatprep.mubr.msk.bf16.mxu1 %vm4126_vm0, %v4122_v23 }
 0x24f   : > { %3680 = vmatprep.subr.bf16.mxu1 %v4122_v23 }
 0x255   : > { %3671 = vmatmul.mubr.msk.bf16.vlgmr.msra.gmra.mrb[16].mxu1 %vm1909_vm1, %v1316_v58 }
 0x256   : > { %3682 = vmatprep.mubr.msk.bf16.mxu1 %vm4126_vm0, %v4122_v23 }
 0x310   : > { %v1950_v5 = vpop.f32.mrb[4].mxu1 }
 0x311   : > { %v2104_v7 = vsel %vm4700_vm3, %v1950_v5, -1e+30  ;;  %v3654_v8 = vpop.f32.mrb[5].mxu1 }
 0x312   : > { %v1953_v6 = vpop.f32.mrb[6].mxu1  ;;  %v2113_v9 = vsel %vm2112_vm4, %v2104_v7, -inf }
 0x313   : > { %v2105_v10 = vsel %vm4700_vm3, %v1953_v6, -1e+30  ;;  %2114 = vmax.xlane.f32.xlu0 %v2113_v9  ;;  %v3655_v11 = vpop.f32.mrb[7].mxu1 }
 0x314   : > { %v2116_v12 = vsel %vm2112_vm4, %v2105_v10, -inf }
 0x315   : > { %2117 = vmax.xlane.f32.xlu1 %v2116_v12 }
 0x318   : > { %v1997_v13 = vpop.f32.mrb[8].mxu1 }
 0x319   : > { %v2106_v14 = vsel %vm4700_vm3, %v1997_v13, -1e+30  ;;  %v3660_v15 = vpop.f32.mrb[9].mxu1 }
 0x31a   : > { %v2000_v16 = vpop.f32.mrb[10].mxu1  ;;  %v2119_v17 = vsel %vm2112_vm4, %v2106_v14, -inf }
 0x31b   : > { %v2107_v18 = vsel %vm4700_vm3, %v2000_v16, -1e+30  ;;  %2120 = vmax.xlane.f32.xlu0 %v2119_v17  ;;  %v3661_v19 = vpop.f32.mrb[11].mxu1 }
 0x31c   : > { %v2122_v20 = vsel %vm2112_vm4, %v2107_v18, -inf }
 0x31f   : > { %2123 = vmax.xlane.f32.xlu0 %v2122_v20 }
 0x320   : > { %v2044_v21 = vpop.f32.mrb[12].mxu1 }
 0x321   : > { %v2108_v22 = vsel %vm4700_vm3, %v2044_v21, -1e+30  ;;  %v3666_v24 = vpop.f32.mrb[13].mxu1 }
 0x322   : > { %v2047_v25 = vpop.f32.mrb[14].mxu1  ;;  %v2125_v27 = vsel %vm2112_vm4, %v2108_v22, -inf }
 0x323   : > { %v4721_v30 = vsel %vm4700_vm3, %v2047_v25, -1e+30  ;;  %2126 = vmax.xlane.f32.xlu1 %v2125_v27  ;;  %v3667_v32 = vpop.f32.mrb[15].mxu1 }
 0x324   : > { %v2128_v33 = vsel %vm2112_vm4, %v4721_v30, -inf }
 0x325   : > { %2129 = vmax.xlane.f32.xlu0 %v2128_v33 }
 0x328   : > { %v2091_v45 = vpop.f32.mrb[16].mxu1 }
 0x329   : > { %v2110_v47 = vsel %vm4700_vm3, %v2091_v45, -1e+30  ;;  %v3672_v48 = vpop.f32.mrb[17].mxu1 }
 0x32a   : > { %v2094_v49 = vpop.f32.mrb[18].mxu1  ;;  %v2131_v34 = vsel %vm2112_vm4, %v2110_v47, -inf }
 0x32b   : > { %v2111_v35 = vsel %vm4700_vm3, %v2094_v49, -1e+30  ;;  %2132 = vmax.xlane.f32.xlu1 %v2131_v34  ;;  %v3673_v36 = vpop.f32.mrb[19].mxu1 }
 0x32c   : > { %v2134_v37 = vsel %vm2112_vm4, %v2111_v35, -inf }
 0x32d   : > { %2135 = vmax.xlane.f32.xlu0 %v2134_v37 }
 0x33c   : > { %1615 = vrot.lane.b32.xlu1 %v4733_v38, %s4124_s6 }
 0x340   : > { %1621 = vrot.lane.b32.xlu1 %v4733_v38, %s4123_s2 }
 0x343   : > { %1617 = vrot.lane.b32.xlu0 %v4739_v39, %s4124_s6 }
 0x344   : > { %1623 = vrot.lane.b32.xlu1 %v4739_v39, %s4123_s2 }
 0x347   : > { %1627 = vrot.lane.b32.xlu0 %v4733_v38, %s4125_s7 }
 0x3a0   : > { %v2115_v29 = vpop.xlane.xlu0 %2114 }
 0x3a1   : > { %v2137_v40 = vsub.f32 %v2104_v7, %v2115_v29 }
 0x3a2   : > { %v2118_v41 = vpop.xlane.xlu1 %2117 }
 0x3a3   : > { %v2145_v42 = vmul.f32 1.442695, %v2137_v40  ;;  %v2138_v44 = vsub.f32 %v2105_v10, %v2118_v41 }
 0x3a5   : > { %3908 = vpow2.f32 %v2145_v42  ;;  %v2147_v46 = vmul.f32 1.442695, %v2138_v44 }
 0x3a7   : > { %3910 = vpow2.f32 %v2147_v46 }
 0x3a8   : > { %v2121_v43 = vpop.xlane.xlu0 %2120 }
 0x3a9   : > { %v2139_v52 = vsub.f32 %v2106_v14, %v2121_v43 }
 0x3ab   : > { %v2149_v53 = vmul.f32 1.442695, %v2139_v52 }
 0x3ac   : > { %v2124_v54 = vpop.xlane.xlu0 %2123 }
 0x3ad   : > { %3912 = vpow2.f32 %v2149_v53  ;;  %v2140_v55 = vsub.f32 %v2107_v18, %v2124_v54 }
 0x3af   : > { %v4747_v57 = vpop.eup %3908  ;;  %v2151_v58 = vmul.f32 1.442695, %v2140_v55 }
 0x3b0   : > { %v2127_v59 = vpop.xlane.xlu1 %2126  ;;  %v2161_v60 = vsel %vm2112_vm4, %v4747_v57, 0.0 }
 0x3b1   : > { %v4751_v61 = vpop.eup %3910  ;;  %3914 = vpow2.f32 %v2151_v58  ;;  %v2141_v62 = vsub.f32 %v2108_v22, %v2127_v59  ;;  %2162 = vadd.xlane.f32.xlu1 %v2161_v60 }
 0x3b2   : > { %v2164_v0 = vsel %vm2112_vm4, %v4751_v61, 0.0  ;;  %v2130_v2 = vpop.xlane.xlu0 %2129 }
 0x3b3   : > { %v2153_v1 = vmul.f32 1.442695, %v2141_v62  ;;  %2165 = vadd.xlane.f32.xlu0 %v2164_v0  ;;  %v2142_v20 = vsub.f32 %v4721_v30, %v2130_v2 }
 0x3b5   : > { %3916 = vpow2.f32 %v2153_v1  ;;  %v2155_v21 = vmul.f32 1.442695, %v2142_v20 }
 0x3b7   : > { %v4755_v3 = vpop.eup %3912 }
 0x3b8   : > { %v2133_v5 = vpop.xlane.xlu1 %2132  ;;  %v2167_v7 = vsel %vm2112_vm4, %v4755_v3, 0.0 }
 0x3b9   : > { %v2143_v8 = vsub.f32 %v2110_v47, %v2133_v5  ;;  %2168 = vadd.xlane.f32.xlu1 %v2167_v7 }
 0x3ba   : > { %v2136_v6 = vpop.xlane.xlu0 %2135 }
 0x3bb   : > { %v4759_v9 = vpop.eup %3914  ;;  %v2157_v10 = vmul.f32 1.442695, %v2143_v8  ;;  %v2144_v11 = vsub.f32 %v2111_v35, %v2136_v6 }
 0x3bc   : > { %v2170_v12 = vsel %vm2112_vm4, %v4759_v9, 0.0  ;;  %v1616_v27 = vpop.permute.xlu1 %1615 }
 0x3bd   : > { %3918 = vpow2.f32 %v2157_v10  ;;  %v2159_v13 = vmul.f32 1.442695, %v2144_v11  ;;  %2171 = vadd.xlane.f32.xlu0 %v2170_v12 }
 0x3be   : > { %v1618_v25 = vpop.permute.xlu0 %1617 }
 0x3bf   : > { %v4763_v14 = vpop.eup %3916  ;;  %3920 = vpow2.f32 %v2159_v13 }
 0x3c0   : > { %v2173_v15 = vsel %vm2112_vm4, %v4763_v14, 0.0  ;;  %3922 = vpow2.f32 %v2155_v21  ;;  %v1622_v33 = vpop.permute.xlu1 %1621 }
 0x3c1   : > { %2174 = vadd.xlane.f32.xlu0 %v2173_v15  ;;  %v1633_v48 = vcombine.low %v4733_v38, %v1622_v33  ;;  %v1634_v49 = vcombine.high %v4733_v38, %v1622_v33 }
 0x3c2   : > { %v1628_v32 = vpop.permute.xlu0 %1627 }
 0x3c3   : > { %v1649_v45 = vcombine.low %v1616_v27, %v1628_v32  ;;  %v1650_v47 = vcombine.high %v1616_v27, %v1628_v32  ;;  %v1641_v36 = vrot.slane %v1633_v48, %v4570_v56  ;;  %v1648_v37 = vrot.slane %v1634_v49, %v4570_v56 }
 0x3c4   : > { %v1624_v35 = vpop.permute.xlu1 %1623 }
 0x3c5   : > { %v1657_v30 = vrot.slane %v1649_v45, %v4570_v56  ;;  %v1664_v34 = vrot.slane %v1650_v47, %v4570_v56  ;;  %v1701_v53 = vcombine.low %v4739_v39, %v1624_v35  ;;  %v1702_v54 = vcombine.high %v4739_v39, %v1624_v35 }
 0x3c7   : > { %v4767_v16 = vpop.eup %3918  ;;  %v1665_v50 = vcombine.low %v1641_v36, %v1657_v30  ;;  %v1666_v51 = vcombine.high %v1641_v36, %v1657_v30  ;;  %v1681_v29 = vcombine.low %v1648_v37, %v1664_v34  ;;  %v1682_v40 = vcombine.high %v1648_v37, %v1664_v34 }
 0x3c8   : > { %v2179_v17 = vsel %vm2112_vm4, %v4767_v16, 0.0  ;;  %v1709_v5 = vrot.slane %v1701_v53, %v4570_v56  ;;  %v1716_v7 = vrot.slane %v1702_v54, %v4570_v56 }
 0x3c9   : > { %v4771_v18 = vpop.eup %3920  ;;  %2180 = vadd.xlane.f32.xlu0 %v2179_v17  ;;  %v1673_v42 = vrot.slane %v1665_v50, %v4573_v63  ;;  %v1680_v44 = vrot.slane %v1666_v51, %v4573_v63  ;;  %v1689_v38 = vrot.slane %v1681_v29, %v4573_v63  ;;  %v1696_v46 = vrot.slane %v1682_v40, %v4573_v63 }
 0x3ca   : > { %1629 = vrot.lane.b32.xlu1 %v4739_v39, %s4125_s7  ;;  %v2182_v19 = vsel %vm2112_vm4, %v4771_v18, 0.0  ;;  %v4778_v22 = vpop.eup %3922 }
 0x3cb   : > { %v2176_v24 = vsel %vm2112_vm4, %v4778_v22, 0.0  ;;  %v1769_v55 = vcombine.low %v1673_v42, %v1680_v44  ;;  %v3505_v58 = vcombine.high %v1673_v42, %v1680_v44  ;;  %v1785_v59 = vcombine.low %v1689_v38, %v1696_v46 }
 0x3cc   : > { %v3506_v60 = vcombine.high %v1689_v38, %v1696_v46 }
 0x3cd   : > { %2183 = vadd.xlane.f32.xlu0 %v2182_v19  ;;  %v1776_v8 = vrot.slane %v1769_v55, %v4570_v56  ;;  %v1784_v10 = vrot.slane %v3505_v58, %v4570_v56  ;;  %v1792_v11 = vrot.slane %v1785_v59, %v4570_v56 }
 0x3ce   : > { %v1800_v12 = vrot.slane %v3506_v60, %v4570_v56 }
 0x3cf   : > { %v1801_v32 = vcombine.low %v1776_v8, %v1784_v10  ;;  %v1802_v40 = vcombine.high %v1776_v8, %v1784_v10 }
 0x3d0   : > { %v1817_v33 = vcombine.low %v1792_v11, %v1800_v12 }
 0x3d1   : > { %v1809_v51 = vrot.slane %v1801_v32, %v4573_v63 }
 0x3d2   : > { %v1825_v29 = vrot.slane %v1817_v33, %v4573_v63 }
 0x3d4   : > { %v1833_v60 = vcombine.low %v1809_v51, %v1825_v29 }
 0x3ee   : > { %2177 = vadd.xlane.f32.xlu1 %v2176_v24 }
 0x43e   : > { %v2163_v41 = vpop.xlane.xlu1 %2162 }
 0x43f   : > { %3924 = vrcp.f32 %v2163_v41  ;;  %v1818_v41 = vcombine.high %v1792_v11, %v1800_v12 }
 0x440   : > { %v2166_v52 = vpop.xlane.xlu0 %2165 }
 0x441   : > { %3926 = vrcp.f32 %v2166_v52 }
 0x446   : > { %v2169_v43 = vpop.xlane.xlu1 %2168 }
 0x449   : > { %v3925_v37 = vpop.eup %3924 }
 0x44a   : > { %v1630_v62 = vpop.permute.xlu1 %1629  ;;  %v2172_v2 = vpop.xlane.xlu0 %2171 }
 0x44b   : > { %v1717_v0 = vcombine.low %v1618_v25, %v1630_v62  ;;  %v1718_v1 = vcombine.high %v1618_v25, %v1630_v62  ;;  %3928 = vrcp.f32 %v2172_v2  ;;  %v3927_v42 = vpop.eup %3926  ;;  %v1816_v62 = vrot.slane %v1802_v40, %v4573_v63 }
 0x44c   : > { %3930 = vrcp.f32 %v2169_v43  ;;  %v2194_v8 = vmul.f32 %v3927_v42, %v4751_v61 }
 0x44d   : > { %v1725_v6 = vrot.slane %v1717_v0, %v4570_v56  ;;  %v1732_v39 = vrot.slane %v1718_v1, %v4570_v56  ;;  %v1832_v0 = vrot.slane %v1818_v41, %v4573_v63 }
 0x44e   : > { %v4806_v27 = vpop.xlane.xlu0 %2174 }
 0x44f   : > { %v1733_v13 = vcombine.low %v1709_v5, %v1725_v6  ;;  %v1734_v15 = vcombine.high %v1709_v5, %v1725_v6  ;;  %v1749_v17 = vcombine.low %v1716_v7, %v1732_v39  ;;  %v1750_v19 = vcombine.high %v1716_v7, %v1732_v39 }
 0x450   : > { %v1834_v5 = vcombine.high %v1809_v51, %v1825_v29 }
 0x451   : > { %v1741_v20 = vrot.slane %v1733_v13, %v4573_v63  ;;  %v1748_v21 = vrot.slane %v1734_v15, %v4573_v63  ;;  %v1757_v24 = vrot.slane %v1749_v17, %v4573_v63  ;;  %v1764_v25 = vrot.slane %v1750_v19, %v4573_v63 }
 0x452   : > { %v2193_v13 = vmul.f32 %v3925_v37, %v4747_v57  ;;  %v1835_v17 = vcombine.low %v1816_v62, %v1832_v0  ;;  %v1836_v19 = vcombine.high %v1816_v62, %v1832_v0 }
 0x453   : > { %v1837_v45 = vcombine.low %v1741_v20, %v1748_v21  ;;  %v3507_v47 = vcombine.high %v1741_v20, %v1748_v21  ;;  %v1853_v48 = vcombine.low %v1757_v24, %v1764_v25  ;;  %v3508_v49 = vcombine.high %v1757_v24, %v1764_v25 }
 0x454   : > { %v2201_v20 = vpack.c.bf16 %v2194_v8, %v2193_v13 }
 0x455   : > { %v1844_v30 = vrot.slane %v1837_v45, %v4570_v56  ;;  %v1852_v34 = vrot.slane %v3507_v47, %v4570_v56  ;;  %v1860_v35 = vrot.slane %v1853_v48, %v4570_v56  ;;  %v1868_v36 = vrot.slane %v3508_v49, %v4570_v56  ;;  %v3929_v43 = vpop.eup %3928  ;;  %v3862_v49 = vld [vmem:[%s4403_s3 + $0x10] sm:$0xff]  }
 0x456   : > { %v2181_v50 = vpop.xlane.xlu0 %2180  ;;  %v3931_v58 = vpop.eup %3930  ;;  %v2196_v6 = vmul.f32 %v3929_v43, %v4759_v9 }
 0x457   : > { %v1869_v44 = vcombine.low %v1844_v30, %v1852_v34  ;;  %v1885_v38 = vcombine.low %v1860_v35, %v1868_v36  ;;  %v1870_v46 = vcombine.high %v1844_v30, %v1852_v34  ;;  %v1886_v52 = vcombine.high %v1860_v35, %v1868_v36  ;;  %v3865_v30 = vld [vmem:[%s4403_s3 + $0x28] sm:$0xff]  }
 0x458   : > { %3932 = vrcp.f32 %v2181_v50  ;;  %v2195_v15 = vmul.f32 %v3931_v58, %v4755_v3 }
 0x459   : > { %v1877_v53 = vrot.slane %v1869_v44, %v4573_v63  ;;  %v1893_v54 = vrot.slane %v1885_v38, %v4573_v63  ;;  %v1884_v55 = vrot.slane %v1870_v46, %v4573_v63  ;;  %v1900_v1 = vrot.slane %v1886_v52, %v4573_v63 }
 0x45a   : > { %v2184_v59 = vpop.xlane.xlu0 %2183  ;;  %v2202_v21 = vpack.c.bf16 %v2196_v6, %v2195_v15 }
 0x45b   : > { %3934 = vrcp.f32 %v2184_v59  ;;  %v1901_v2 = vcombine.low %v1877_v53, %v1893_v54  ;;  %v1902_v7 = vcombine.high %v1877_v53, %v1893_v54  ;;  %v1903_v11 = vcombine.low %v1884_v55, %v1900_v1 }
 0x45c   : > { %v1904_v12 = vcombine.high %v1884_v55, %v1900_v1  ;;  %3936 = vrcp.f32 %v4806_v27  ;;  %v3861_v27 = vld [vmem:[%s4403_s3 + $0x8] sm:$0xff]  }
 0x45d   : > { %v1905_v39 = vpack.c.bf16 %v1901_v2, %v1833_v60  ;;  %v1906_v10 = vpack.c.bf16 %v1902_v7, %v1834_v5  ;;  %v1907_v61 = vpack.c.bf16 %v1903_v11, %v1835_v17 }
 0x45e   : > { %v1908_v9 = vpack.c.bf16 %v1904_v12, %v1836_v19 }
 0x45f   : > { %3675 = vmatpush3.bf16.msra.mxu0 %v1905_v39  ;;  %3681 = vmatpush3.bf16.msra.mxu1 %v1906_v10 }
 0x460   : > { %3686 = vmatprep.subr.bf16.mxu0 %v4122_v23  ;;  %3692 = vmatprep.subr.bf16.mxu1 %v4122_v23 }
 0x462   : > { %3677 = vmatmul.mubr.msk.bf16.vlgmr.msra.gmra.mrb[4].mxu0 %vm2112_vm4, %v2201_v20  ;;  %3683 = vmatmul.mubr.msk.bf16.vlgmr.msra.gmra.mrb[20].mxu1 %vm2112_vm4, %v2202_v21  ;;  %v3933_v24 = vpop.eup %3932 }
 0x463   : > { %3687 = vmatpush3.bf16.msra.mxu0 %v1907_v61  ;;  %3693 = vmatpush3.bf16.msra.mxu1 %v1908_v9  ;;  %v2199_v3 = vmul.f32 %v3933_v24, %v4767_v16 }
 0x464   : > { %3694 = vmatprep.mubr.msk.bf16.mxu1 %vm4126_vm0, %v4122_v23  ;;  %3688 = vmatprep.mubr.msk.bf16.mxu0 %vm4126_vm0, %v4122_v23 }
 0x465   : > { %v3935_v57 = vpop.eup %3934  ;;  %3698 = vmatprep.subr.bf16.mxu0 %v4122_v23 }
 0x466   : > { %v2200_v25 = vmul.f32 %v3935_v57, %v4771_v18  ;;  %v3937_v45 = vpop.eup %3936 }
 0x467   : > { %v2197_v48 = vmul.f32 %v3937_v45, %v4763_v14  ;;  %v3863_v14 = vld [vmem:[%s4403_s3 + $0x18] sm:$0xff]  }
 0x468   : > { %v2204_v32 = vpack.c.bf16 %v2200_v25, %v2199_v3 }
 0x46a   : > { %3695 = vmatmul.mubr.msk.bf16.vlgmr.msra.gmra.mrb[24].mxu1 %vm2112_vm4, %v2204_v32 }
 0x46b   : > { %2982 = vmatprep.mubr.bf16.mxu1 %v4121_v4  ;;  %v3860_v4 = vld [vmem:[%s4403_s3] sm:$0xff]  }
 0x47b   : > { %v2178_v33 = vpop.xlane.xlu1 %2177 }
 0x47c   : > { %3938 = vrcp.f32 %v2178_v33 }
 0x486   : > { %v3939_v47 = vpop.eup %3938 }
 0x487   : > { %v2198_v16 = vmul.f32 %v3939_v47, %v4778_v22  ;;  %v3864_v22 = vld [vmem:[%s4403_s3 + $0x20] sm:$0xff]  }
 0x489   : > { %v2203_v18 = vpack.c.bf16 %v2198_v16, %v2197_v48 }
 0x48b   : > { %3689 = vmatmul.mubr.msk.bf16.vlgmr.msra.gmra.mrb[8].mxu0 %vm2112_vm4, %v2203_v18 }
 0x48c   : > { %3714 = vmatprep.mubr.msk.bf16.mxu0 %vm4126_vm0, %v4122_v23  ;;  %3699 = vmatpush3.bf16.msra.mxu0 %v3860_v4 }
 0x48d   : > { %3700 = vmatprep.subr.bf16.mxu0 %v4122_v23 }
 0x490   : > { %3701 = vmatpush3.bf16.msra.mxu0 %v3861_v27 }
 0x491   : > { %3702 = vmatprep.subr.bf16.mxu0 %v4122_v23 }
 0x494   : > { %3703 = vmatpush3.bf16.msra.mxu0 %v3862_v49 }
 0x495   : > { %3704 = vmatprep.subr.bf16.mxu0 %v4122_v23 }
 0x498   : > { %3705 = vmatpush3.bf16.msra.mxu0 %v3863_v14 }
 0x499   : > { %3706 = vmatprep.subr.bf16.mxu0 %v4122_v23 }
 0x49c   : > { %3707 = vmatpush3.bf16.msra.mxu0 %v3864_v22 }
 0x49d   : > { %3708 = vmatprep.subr.bf16.mxu0 %v4122_v23 }
 0x4a0   : > { %3709 = vmatpush3.bf16.msra.mxu0 %v3865_v30 }
 0x4a1   : > { %3710 = vmatprep.subr.bf16.mxu0 %v4122_v23 }
 0x535   : > { %v2242_v34 = vpop.f32.mrb[4].mxu0  ;;  %v2286_v35 = vpop.f32.mrb[20].mxu1 }
 0x536   : > { %v3678_v36 = vpop.f32.mrb[5].mxu0  ;;  %v3684_v37 = vpop.f32.mrb[21].mxu1 }
 0x537   : > { %v2245_v50 = vpop.f32.mrb[6].mxu0  ;;  %v2289_v51 = vpop.f32.mrb[22].mxu1 }
 0x538   : > { %v3679_v29 = vpop.f32.mrb[7].mxu0  ;;  %v3685_v40 = vpop.f32.mrb[23].mxu1 }
 0x539   : > { %v3866_v29 = vld [vmem:[%s4403_s3 + $0x30] sm:$0xff]  }
 0x53a   : > { %3711 = vmatpush3.bf16.msra.mxu0 %v3866_v29 }
 0x53b   : > { %3712 = vmatprep.subr.bf16.mxu0 %v4122_v23 }
 0x53d   : > { %v2374_v41 = vpop.f32.mrb[24].mxu1 }
 0x53e   : > { %v2397_v42 = vcombine.low %v2286_v35, %v2374_v41  ;;  %v2398_v44 = vcombine.high %v2286_v35, %v2374_v41  ;;  %v3696_v38 = vpop.f32.mrb[25].mxu1 }
 0x53f   : > { %v2377_v46 = vpop.f32.mrb[26].mxu1 }
 0x540   : > { %v2465_v43 = vcombine.low %v2289_v51, %v2377_v46  ;;  %v2466_v52 = vcombine.high %v2289_v51, %v2377_v46  ;;  %v3697_v53 = vpop.f32.mrb[27].mxu1  ;;  %v2405_v60 = vrot.slane %v2397_v42, %v4570_v56  ;;  %v2412_v62 = vrot.slane %v2398_v44, %v4570_v56 }
 0x542   : > { %v2473_v12 = vrot.slane %v2465_v43, %v4570_v56  ;;  %v2480_v13 = vrot.slane %v2466_v52, %v4570_v56 }
 0x55e   : > { %v2330_v54 = vpop.f32.mrb[8].mxu0 }
 0x55f   : > { %v2381_v55 = vcombine.low %v2242_v34, %v2330_v54  ;;  %v2382_v58 = vcombine.high %v2242_v34, %v2330_v54  ;;  %v3690_v59 = vpop.f32.mrb[9].mxu0 }
 0x560   : > { %v2333_v0 = vpop.f32.mrb[10].mxu0 }
 0x561   : > { %v2389_v1 = vrot.slane %v2381_v55, %v4570_v56  ;;  %v2396_v2 = vrot.slane %v2382_v58, %v4570_v56  ;;  %v2449_v5 = vcombine.low %v2245_v50, %v2333_v0  ;;  %v2450_v7 = vcombine.high %v2245_v50, %v2333_v0  ;;  %v3691_v8 = vpop.f32.mrb[11].mxu0 }
 0x563   : > { %v2413_v6 = vcombine.low %v2389_v1, %v2405_v60  ;;  %v2414_v39 = vcombine.high %v2389_v1, %v2405_v60  ;;  %v2429_v10 = vcombine.low %v2396_v2, %v2412_v62  ;;  %v2430_v11 = vcombine.high %v2396_v2, %v2412_v62 }
 0x564   : > { %v2457_v15 = vrot.slane %v2449_v5, %v4570_v56  ;;  %v2464_v17 = vrot.slane %v2450_v7, %v4570_v56  ;;  %v3867_v7 = vld [vmem:[%s4403_s3 + $0x38] sm:$0xff]  }
 0x565   : > { %v2421_v19 = vrot.slane %v2413_v6, %v4573_v63  ;;  %v2428_v20 = vrot.slane %v2414_v39, %v4573_v63  ;;  %v2437_v21 = vrot.slane %v2429_v10, %v4573_v63  ;;  %v2444_v61 = vrot.slane %v2430_v11, %v4573_v63  ;;  %3713 = vmatpush3.bf16.msra.mxu0 %v3867_v7  ;;  %v3889_v7 = vld [vmem:[%s4412_s23 + $0x70] ss:$8 sps:$4 sm:$0xff]  }
 0x566   : > { %v2481_v9 = vcombine.low %v2457_v15, %v2473_v12  ;;  %v2482_v24 = vcombine.high %v2457_v15, %v2473_v12  ;;  %v2497_v57 = vcombine.low %v2464_v17, %v2480_v13  ;;  %v2498_v3 = vcombine.high %v2464_v17, %v2480_v13 }
 0x567   : > { %v2517_v25 = vcombine.low %v2421_v19, %v2428_v20  ;;  %v3517_v32 = vcombine.high %v2421_v19, %v2428_v20  ;;  %v2533_v33 = vcombine.low %v2437_v21, %v2444_v61  ;;  %v3518_v45 = vcombine.high %v2437_v21, %v2444_v61 }
 0x568   : > { %v2489_v47 = vrot.slane %v2481_v9, %v4573_v63  ;;  %v2496_v48 = vrot.slane %v2482_v24, %v4573_v63  ;;  %v2505_v16 = vrot.slane %v2497_v57, %v4573_v63  ;;  %v2512_v18 = vrot.slane %v2498_v3, %v4573_v63 }
 0x569   : > { %v2524_v4 = vrot.slane %v2517_v25, %v4570_v56  ;;  %v2532_v27 = vrot.slane %v3517_v32, %v4570_v56  ;;  %v2540_v49 = vrot.slane %v2533_v33, %v4570_v56  ;;  %v2548_v14 = vrot.slane %v3518_v45, %v4570_v56 }
 0x56a   : > { %v2585_v22 = vcombine.low %v2489_v47, %v2496_v48  ;;  %v3519_v30 = vcombine.high %v2489_v47, %v2496_v48  ;;  %v2601_v34 = vcombine.low %v2505_v16, %v2512_v18  ;;  %v3520_v35 = vcombine.high %v2505_v16, %v2512_v18  ;;  %v3521_v47 = vld [vmem:[%s5072_s24] ss:$0 sm:$0xff] }
 0x56b   : > { %v2550_v36 = vcombine.high %v2524_v4, %v2532_v27  ;;  %v2566_v37 = vcombine.high %v2540_v49, %v2548_v14  ;;  %v2549_v50 = vcombine.low %v2524_v4, %v2532_v27  ;;  %v2565_v51 = vcombine.low %v2540_v49, %v2548_v14  ;;  %v3948_v14 = vld [vmem:[#allocation2] sm:$0xff] }
 0x56c   : > { %v2592_v40 = vrot.slane %v2585_v22, %v4570_v56  ;;  %v2600_v41 = vrot.slane %v3519_v30, %v4570_v56  ;;  %v2608_v42 = vrot.slane %v2601_v34, %v4570_v56  ;;  %v2616_v44 = vrot.slane %v3520_v35, %v4570_v56  ;;  %v3949_v30 = vld [vmem:[#allocation2 + $0x8] sm:$0xff]  ;;  %v3868_v35 = vld [vmem:[%s4412_s23] ss:$8 sps:$4 sm:$0xff]  }
 0x56d   : > { %v2564_v38 = vrot.slane %v2550_v36, %v4573_v63  ;;  %v2580_v46 = vrot.slane %v2566_v37, %v4573_v63  ;;  %v2557_v43 = vrot.slane %v2549_v50, %v4573_v63  ;;  %v2573_v52 = vrot.slane %v2565_v51, %v4573_v63  ;;  %v3870_v36 = vld [vmem:[%s4412_s23 + $0x4] ss:$8 sps:$4 sm:$0xff]   ;;  %v3873_v37 = vld [vmem:[%s4412_s23 + $0x14] ss:$8 sps:$4 sm:$0xff]   ;;  %v3871_v50 = vld [vmem:[%s4412_s23 + $0x10] ss:$8 sps:$4 sm:$0xff]  }
 0x56e   : > { %v2618_v53 = vcombine.high %v2592_v40, %v2600_v41  ;;  %v2634_v54 = vcombine.high %v2608_v42, %v2616_v44  ;;  %v2617_v55 = vcombine.low %v2592_v40, %v2600_v41  ;;  %v2633_v58 = vcombine.low %v2608_v42, %v2616_v44  ;;  %2950 = vmatprep.subr.bf16.mxu1 %v3870_v36 }
 0x56f   : > { %v2583_v59 = vcombine.low %v2564_v38, %v2580_v46  ;;  %v2581_v60 = vcombine.low %v2557_v43, %v2573_v52  ;;  %v2582_v62 = vcombine.high %v2557_v43, %v2573_v52  ;;  %v2584_v56 = vcombine.high %v2564_v38, %v2580_v46  ;;  %2951 = vmatpush1.bf16.msra.mxu1 %v3868_v35  ;;  %v3876_v43 = vld [vmem:[%s4412_s23 + $0x24] ss:$8 sps:$4 sm:$0xff]   ;;  %v3874_v52 = vld [vmem:[%s4412_s23 + $0x20] ss:$8 sps:$4 sm:$0xff]  }
 0x570   : > { %v2632_v0 = vrot.slane %v2618_v53, %v4573_v63  ;;  %v2648_v1 = vrot.slane %v2634_v54, %v4573_v63  ;;  %v2625_v2 = vrot.slane %v2617_v55, %v4573_v63  ;;  %v2641_v5 = vrot.slane %v2633_v58, %v4573_v63  ;;  %2952 = vmatprep.subr.bf16.mxu1 %v3873_v37  ;;  %v3879_v53 = vld [vmem:[%s4412_s23 + $0x34] ss:$8 sps:$4 sm:$0xff]   ;;  %v3877_v54 = vld [vmem:[%s4412_s23 + $0x30] ss:$8 sps:$4 sm:$0xff]   ;;  %v3880_v55 = vld [vmem:[%s4412_s23 + $0x40] ss:$8 sps:$4 sm:$0xff]  }
 0x571   : > { %v3882_v58 = vld [vmem:[%s4412_s23 + $0x44] ss:$8 sps:$4 sm:$0xff]  }
 0x572   : > { %v2651_v8 = vcombine.low %v2632_v0, %v2648_v1  ;;  %v2650_v6 = vcombine.high %v2625_v2, %v2641_v5  ;;  %v2649_v39 = vcombine.low %v2625_v2, %v2641_v5  ;;  %v2652_v10 = vcombine.high %v2632_v0, %v2648_v1  ;;  %v3891_v0 = vld [vmem:[%s4412_s23 + $0x74] ss:$8 sps:$4 sm:$0xff]   ;;  %v3892_v1 = vld [vmem:[%s4476_s30 + $0x40] sm:$0xff]   ;;  %v3894_v5 = vld [vmem:[%s4476_s30 + $0x48] sm:$0xff]  }
 0x573   : > { %2953 = vmatpush1.bf16.msra.mxu1 %v3871_v50  ;;  %v3893_v2 = vld [vmem:[%s4476_s30] sm:$0xff]   ;;  %3608 = vmatprep.subr.bf16.mxu0 %v3892_v1 }
 0x574   : > { %v3818_v11 = vpack.i.bf16 %v2651_v8, %v2583_v59  ;;  %v3813_v23 = vpack.i.bf16 %v2650_v6, %v2582_v62  ;;  %v3823_v12 = vpack.i.bf16 %v2652_v10, %v2584_v56  ;;  %2954 = vmatprep.subr.bf16.mxu1 %v3876_v43  ;;  %v3885_v59 = vld [vmem:[%s4412_s23 + $0x54] ss:$8 sps:$4 sm:$0xff]   ;;  %v3888_v62 = vld [vmem:[%s4412_s23 + $0x64] ss:$8 sps:$4 sm:$0xff]   ;;  %v3886_v56 = vld [vmem:[%s4412_s23 + $0x60] ss:$8 sps:$4 sm:$0xff]  }
 0x575   : > { %v3895_v8 = vld [vmem:[%s4476_s30 + $0x8] sm:$0xff]   ;;  %v3896_v6 = vld [vmem:[%s4476_s30 + $0x50] sm:$0xff]   ;;  %v3898_v10 = vld [vmem:[%s4476_s30 + $0x58] sm:$0xff]  }
 0x576   : > { %3819 = vrot.lane.b32.xlu0 %v3818_v11, %s4123_s2  ;;  %3814 = vrot.lane.b32.xlu1 %v3813_v23, %s4125_s7  ;;  %v3899_v11 = vld [vmem:[%s4476_s30 + $0x18] sm:$0xff]   ;;  %v3900_v23 = vld [vmem:[%s4476_s30 + $0x60] sm:$0xff]  }
 0x577   : > { %2955 = vmatpush1.bf16.msra.mxu1 %v3874_v52 }
 0x578   : > { %2956 = vmatprep.subr.bf16.mxu1 %v3879_v53 }
 0x57a   : > { %3824 = vrot.lane.b32.xlu1 %v3823_v12, %s4124_s6  ;;  %v3901_v12 = vld [vmem:[%s4476_s30 + $0x20] sm:$0xff]  }
 0x57b   : > { %2957 = vmatpush1.bf16.msra.mxu1 %v3877_v54 }
 0x57c   : > { %2958 = vmatprep.subr.bf16.mxu1 %v3882_v58 }
 0x57f   : > { %2959 = vmatpush1.bf16.msra.mxu1 %v3880_v55 }
 0x580   : > { %2960 = vmatprep.subr.bf16.mxu1 %v3885_v59 }
 0x5e8   : > { %v3820_v13 = vpop.permute.xlu0 %3819  ;;  %v3815_v15 = vpop.permute.xlu1 %3814 }
 0x5e9   : > { %v3817_v17 = vunpack.i.h.bf16 %v3815_v15  ;;  %v3816_v19 = vunpack.i.l.bf16 %v3815_v15  ;;  %v3822_v63 = vunpack.i.h.bf16 %v3820_v13  ;;  %v3821_v20 = vunpack.i.l.bf16 %v3820_v13  ;;  %v3902_v13 = vld [vmem:[%s4476_s30 + $0x68] sm:$0xff]  }
 0x5eb   : > { %v2677_v21 = vsel %vm1909_vm1, %v2581_v60, %v3816_v19  ;;  %v2678_v61 = vsel %vm1909_vm1, %v2649_v39, %v3817_v17  ;;  %v3883_v60 = vld [vmem:[%s4412_s23 + $0x50] ss:$8 sps:$4 sm:$0xff]  }
 0x5ec   : > { %v3825_v9 = vpop.permute.xlu1 %3824  ;;  %v2680_v3 = vsel %vm2679_vm5, %v2677_v21, %v3821_v20  ;;  %v2681_v25 = vsel %vm2679_vm5, %v2678_v61, %v3822_v63  ;;  %2961 = vmatpush1.bf16.msra.mxu1 %v3883_v60  ;;  %v3897_v39 = vld [vmem:[%s4476_s30 + $0x10] sm:$0xff]  }
 0x5ed   : > { %v3827_v24 = vunpack.i.h.bf16 %v3825_v9  ;;  %v3826_v57 = vunpack.i.l.bf16 %v3825_v9  ;;  %2962 = vmatprep.subr.bf16.mxu1 %v3888_v62  ;;  %v3530_v9 = vld [vmem:[%s5074_s9] ss:$0 sm:$0xff] }
 0x5ef   : > { %v2683_v32 = vsel %vm2682_vm6, %v2680_v3, %v3826_v57  ;;  %v2684_v33 = vsel %vm2682_vm6, %v2681_v25, %v3827_v24 }
 0x5f0   : > { %v2685_v45 = vpack.c.bf16 %v2684_v33, %v2683_v32  ;;  %2963 = vmatpush1.bf16.msra.mxu1 %v3886_v56  ;;  %v3531_v32 = vld [vmem:[%s5076_s14] ss:$0 sm:$0xff] }
 0x5f1   : > { %2964 = vmatprep.subr.bf16.mxu1 %v3891_v0 }
 0x5f2   : > { %3715 = vmatmul.mubr.bf16.vlgmr.msra.gmra.mrb[12].mxu0 %v2685_v45 }
 0x5f3   : > { %3609 = vmatpush3.bf16.msra.mxu0 %v3893_v2 }
 0x5f4   : > { %3610 = vmatprep.subr.bf16.mxu0 %v3894_v5  ;;  %2965 = vmatpush1.bf16.msra.mxu1 %v3889_v7 }
 0x5f7   : > { %3611 = vmatpush3.bf16.msra.mxu0 %v3895_v8 }
 0x5f8   : > { %3612 = vmatprep.subr.bf16.mxu0 %v3896_v6 }
 0x5fb   : > { %3613 = vmatpush3.bf16.msra.mxu0 %v3897_v39 }
 0x5fc   : > { %3614 = vmatprep.subr.bf16.mxu0 %v3898_v10 }
 0x5ff   : > { %3615 = vmatpush3.bf16.msra.mxu0 %v3899_v11 }
 0x600   : > { %3616 = vmatprep.subr.bf16.mxu0 %v3900_v23 }
 0x603   : > { %3617 = vmatpush3.bf16.msra.mxu0 %v3901_v12 }
 0x604   : > { %3618 = vmatprep.subr.bf16.mxu0 %v3902_v13 }
 0x6c5   : > { %v2791_v48 = vpop.f32.mrb[12].mxu0 }
 0x6c6   : > { %v2792_v16 = vadd.f32 %v3521_v47, %v2791_v48  ;;  %v3716_v18 = vpop.f32.mrb[13].mxu0 }
 0x6c7   : > { %v2794_v4 = vpop.f32.mrb[14].mxu0  ;;  %v3904_v18 = vld [vmem:[%s4476_s30 + $0x70] sm:$0xff]  }
 0x6c8   : > { %v2795_v27 = vadd.f32 %v3521_v47, %v2794_v4  ;;  %v3717_v49 = vpop.f32.mrb[15].mxu0  ;;  %v2798_v22 = vadd.f32 %v3948_v14, %v2792_v16  ;;  %v3903_v16 = vld [vmem:[%s4476_s30 + $0x28] sm:$0xff]   ;;  %v3905_v4 = vld [vmem:[%s4476_s30 + $0x30] sm:$0xff]  }
 0x6c9   : > { %3619 = vmatpush3.bf16.msra.mxu0 %v3903_v16  ;;  %v3907_v49 = vld [vmem:[%s4476_s30 + $0x38] sm:$0xff]   ;;  %v2858_v14 = vld [vmem:[%s4462_s1] sm:$0x3] }
 0x6ca   : > { %2802 = vadd.xlane.f32.xlu1 %v2798_v22  ;;  %v2799_v34 = vadd.f32 %v3949_v30, %v2795_v27  ;;  %v3906_v27 = vld [vmem:[%s4476_s30 + $0x78] sm:$0xff]   ;;  %3620 = vmatprep.subr.bf16.mxu0 %v3904_v18  ;;  %v2867_v30 = vrot.slane %v2858_v14, %v796_v28 }
 0x6cc   : > { %2804 = vadd.xlane.f32.xlu0 %v2799_v34 }
 0x6cd   : > { %3621 = vmatpush3.bf16.msra.mxu0 %v3905_v4 }
 0x6ce   : > { %3622 = vmatprep.subr.bf16.mxu0 %v3906_v27 }
 0x6d1   : > { %3623 = vmatpush3.bf16.msra.mxu0 %v3907_v49 }
 0x757   : > { %v2803_v51 = vpop.xlane.xlu1 %2802 }
 0x758   : > { %v2807_v29 = vmul.f32 0.0078125, %v2803_v51 }
 0x759   : > { %v2805_v40 = vpop.xlane.xlu0 %2804 }
 0x75a   : > { %v4904_v41 = vsub.f32 %v2798_v22, %v2807_v29  ;;  %v2808_v42 = vmul.f32 0.0078125, %v2805_v40  ;;  %v2863_v22 = vrot.slane %v2858_v14, %v4519_v31 }
 0x75c   : > { %v4906_v44 = vsub.f32 %v2799_v34, %v2808_v42  ;;  %v2811_v38 = vmul.f32 %v4904_v41, %v4904_v41 }
 0x75e   : > { %2813 = vadd.xlane.f32.xlu0 %v2811_v38  ;;  %v2812_v46 = vmul.f32 %v4906_v44, %v4906_v44 }
 0x760   : > { %2815 = vadd.xlane.f32.xlu1 %v2812_v46 }
 0x7eb   : > { %v2814_v15 = vpop.xlane.xlu0 %2813 }
 0x7ec   : > { %v2817_v17 = vmul.f32 0.0078125, %v2814_v15 }
 0x7ed   : > { %v2816_v19 = vpop.xlane.xlu1 %2815 }
 0x7ee   : > { %v2819_v63 = vadd.f32 1e-05, %v2817_v17  ;;  %v2818_v20 = vmul.f32 0.0078125, %v2816_v19  ;;  %v3565_v17 = vld [vmem:[%s692_s10] ss:$0 sm:$0xff]  ;;  %s5080_s10 = sld [smem:[#allocation33_spill]] (!%p3567_p0) }
 0x7f0   : > { %3940 = vrsqrt.f32 %v2819_v63  ;;  %v2820_v21 = vadd.f32 1e-05, %v2818_v20  ;;  %v3566_v20 = vld [vmem:[%s695_s29] ss:$0 sm:$0xff] }
 0x7f2   : > { %3942 = vrsqrt.f32 %v2820_v21 }
 0x7f4   : > { %s5081_s17 = scalar_lea.vmem (!%p3567_p0), %s5080_s10, %s4421_s21 }
 0x7fa   : > { %v3941_v61 = vpop.eup %3940 }
 0x7fb   : > { %v2823_v24 = vmul.f32 %v3941_v61, %v4904_v41 }
 0x7fc   : > { %v3943_v57 = vpop.eup %3942 }
 0x7fd   : > { %v2824_v3 = vmul.f32 %v3943_v57, %v4906_v44  ;;  %v2831_v25 = vmul.f32 %v3530_v9, %v2823_v24 }
 0x7ff   : > { %v2832_v33 = vmul.f32 %v3530_v9, %v2824_v3  ;;  %v2839_v45 = vadd.f32 %v3531_v32, %v2831_v25 }
 0x801   : > { %v2840_v47 = vadd.f32 %v3531_v32, %v2832_v33 }
 0x803   : > { %v2841_v48 = vpack.c.bf16 %v2840_v47, %v2839_v45 }
 0x805   : > { %2983 = vmatmul.mubr.bf16.vlgmr.msra.gmra.mrb[28].mxu1 %v2841_v48 }
 0x8d8   : > { %v2984_v34 = vpop.f32.mrb[28].mxu1 }
 0x8d9   : > { %v2985_v35 = vadd.f32 %v2984_v34, %v2863_v22  ;;  %v2986_v36 = vpop.f32.mrb[29].mxu1 }
 0x8da   : > { %v2987_v37 = vadd.f32 %v2986_v36, %v2867_v30  ;;  %v2988_v50 = vpop.f32.mrb[30].mxu1 }
 0x8db   : > { %v2989_v51 = vadd.f32 %v2988_v50, %v2863_v22  ;;  %v2990_v29 = vpop.f32.mrb[31].mxu1  ;;  %v2993_v41 = vmax.f32 %v2985_v35, 0.0 }
 0x8dc   : > { %v2991_v40 = vadd.f32 %v2990_v29, %v2867_v30  ;;  %v2994_v44 = vmax.f32 %v2987_v37, 0.0 }
 0x8dd   : > { %v2995_v42 = vmax.f32 %v2989_v51, 0.0 }
 0x8de   : > { %v2996_v38 = vmax.f32 %v2991_v40, 0.0 }
 0x8df   : > { %v2997_v46 = vpack.c.bf16 %v2995_v42, %v2993_v41 }
 0x8e0   : > { %v2998_v43 = vpack.c.bf16 %v2996_v38, %v2994_v44 }
 0x8e2   : > { %3166 = vmatprep.mubr.bf16.mxu0 %v2998_v43 }
 0x8e3   : > { %3167 = vmatmul.mubr.bf16.vlgmr.msra.gmra.mrb[16].mxu0 %v2997_v46 }
 0x9b6   : > { %v3624_v31 = vpop.f32.mrb[16].mxu0 }
 0x9b7   : > { %v3625_v28 = vpop.f32.mrb[17].mxu0 }
 0x9b8   : > { %v3626_v52 = vadd.f32 %v3625_v28, %v3624_v31  ;;  %v3627_v53 = vpop.f32.mrb[18].mxu0 }
 0x9b9   : > { %v3628_v54 = vpop.f32.mrb[19].mxu0 }
 0x9ba   : > { %v3169_v55 = vadd.f32 %v3626_v52, %v3548_v26  ;;  %v3629_v58 = vadd.f32 %v3628_v54, %v3627_v53 }
 0x9bc   : > { %v3172_v59 = vadd.f32 %v3629_v58, %v3548_v26  ;;  %v3175_v60 = vadd.f32 %v3169_v55, %v2839_v45 }
 0x9be   : > { %3179 = vadd.xlane.f32.xlu0 %v3175_v60  ;;  %v3176_v62 = vadd.f32 %v3172_v59, %v2840_v47 }
 0x9c0   : > { %3181 = vadd.xlane.f32.xlu1 %v3176_v62 }
 0xa4b   : > { %v3180_v56 = vpop.xlane.xlu0 %3179 }
 0xa4c   : > { %v3183_v0 = vmul.f32 0.0078125, %v3180_v56 }
 0xa4d   : > { %v3182_v1 = vpop.xlane.xlu1 %3181 }
 0xa4e   : > { %v3185_v2 = vsub.f32 %v3175_v60, %v3183_v0  ;;  %v3184_v5 = vmul.f32 0.0078125, %v3182_v1 }
 0xa50   : > { %v3186_v7 = vsub.f32 %v3176_v62, %v3184_v5  ;;  %v3187_v8 = vmul.f32 %v3185_v2, %v3185_v2 }
 0xa52   : > { %3189 = vadd.xlane.f32.xlu0 %v3187_v8  ;;  %v3188_v6 = vmul.f32 %v3186_v7, %v3186_v7 }
 0xa54   : > { %3191 = vadd.xlane.f32.xlu1 %v3188_v6 }
 0xadf   : > { %v3190_v39 = vpop.xlane.xlu0 %3189 }
 0xae0   : > { %v3193_v10 = vmul.f32 0.0078125, %v3190_v39 }
 0xae1   : > { %v3192_v11 = vpop.xlane.xlu1 %3191 }
 0xae2   : > { %v3195_v23 = vadd.f32 1e-05, %v3193_v10  ;;  %v3194_v12 = vmul.f32 0.0078125, %v3192_v11 }
 0xae4   : > { %3944 = vrsqrt.f32 %v3195_v23  ;;  %v3196_v13 = vadd.f32 1e-05, %v3194_v12 }
 0xae6   : > { %3946 = vrsqrt.f32 %v3196_v13 }
 0xaee   : > { %v3945_v15 = vpop.eup %3944 }
 0xaef   : > { %v3199_v19 = vmul.f32 %v3945_v15, %v3185_v2 }
 0xaf0   : > { %v3947_v63 = vpop.eup %3946 }
 0xaf1   : > { %v3207_v21 = vmul.f32 %v3565_v17, %v3199_v19  ;;  %v3200_v61 = vmul.f32 %v3947_v63, %v3186_v7  ;;  %3222 = sbr.rel (%p3567_p0) target bundleno = 2808 (0xaf8), region = 126 }
 0xaf3   : > { %v3215_v9 = vadd.f32 %v3566_v20, %v3207_v21  ;;  %v3208_v24 = vmul.f32 %v3565_v17, %v3200_v61 }
 0xaf5   : > { %3217 = vst [vmem:[#allocation2] sm:$0xff] %v3215_v9  ;;  %v3216_v57 = vadd.f32 %v3566_v20, %v3208_v24  ;;  %3223 = vst [vmem:[%s5081_s17] sm:$0x1] (!%p3567_p0), %v3215_v9 }
 0xaf7   : > { %3218 = vst [vmem:[#allocation2 + $0x8] sm:$0xff] %v3216_v57 }
 0xaf8 PF: > { %s5082_s19 = sld [smem:[#allocation17_spill]]  ;;  %s5083_s29 = sld [smem:[#allocation13_spill]] }
 0xaf9   : > { %s5084_s30 = sld [smem:[#allocation14_spill]]  ;;  %s5085_s15 = sld [smem:[#allocation20_spill]] }
 0xafa   : > { %s5086_s16 = sld [smem:[#allocation15_spill]]  ;;  %s5087_s17 = sld [smem:[#allocation16_spill]] }
 0xafb   : > { %s5088_s18 = sld [smem:[#allocation18_spill]] }
 0xafe   : > { %s30_s20 = sadd.s32 1, %s5082_s19   ;;  %s5089_s19 = sld [smem:[#allocation19_spill]] }
 0xaff   : > { %p27_p4 = scmp.ge.s32.totalorder %s30_s20, 6  }
 0xb01   :  { %29 = sbr.rel (!%p27_p4) target bundleno = 21 (0x15), region = 217 }
 0xb08   :  { %3241 = vsyncpa [#allocation5], 1 }
 0xb09   :  { %3243 = vsyncpa [#allocation5 + $0x1], 1 }
 0xb0a   :  { %3244 = vsyncpa [#allocation7], 1 }
 0xb0b   :  { %3246 = vsyncpa [#allocation7 + $0x1], 1 }
 0xb0c   :  { %3247 = vsyncmov [#allocation3] }
 0xb0f   :  { %s3248_s21 = vpop.sfrf %3247 }
 0xb10   :  { %p3570_p5 = scmp.ne.s32.totalorder %s3248_s21, 0 }
 0xb12   :  { %3252 = shalt.err (%p3570_p5)  }

</bundles_post_ra>
